<compile_context>
chip_gen: v6e
topology: v6e:2x2x1
jax: 0.10.0
libtpu: 0.0.40
codegen_flags: <defaults>
</compile_context>

<pallas_src>
import functools

import jax
import jax.numpy as jnp
from jax.experimental import pallas as pl
from jax.experimental.pallas import tpu as pltpu


# ------------------------------ Fused kernel -------------------------------- #

def _fused_attention_kernel(x_ref, wqkv_ref, wproj_ref, bproj_ref, o_ref, *,
                            num_heads):
    """One grid step == Bt batch elements. All refs are VMEM-resident.

    x_ref:     (Bt, N, C)  f32
    wqkv_ref:  (C, 3C)     bf16, columns ordered [q | k | v], head-major inside
                           each third (matches torch reshape(B, N, 3, H, D));
                           the q-columns are pre-scaled by head_dim**-0.5.
    wproj_ref: (C, C)      bf16
    bproj_ref: (1, C)      f32
    o_ref:     (Bt, N, C)
    """
    Bt, N, C = x_ref.shape
    H = num_heads
    D = C // H
    R = Bt * N

    # ---- qkv projection: bf16 operands on the MXU fast path, f32 accumulate.
    x = x_ref[...].reshape(R, C).astype(jnp.bfloat16)
    qkv = jnp.dot(x, wqkv_ref[...], preferred_element_type=jnp.float32)  # (R,3C) f32
    qkv = qkv.reshape(Bt, N, 3 * C)

    # ---- per-head attention, batched over the Bt packed batch elements.
    # Heads are static lane slices of the VMEM-resident qkv block; each head's
    # two matmuls are 3-D dot_generals batched over Bt.
    # TODO(synk): at production head_dim (>=64) fold the head axis into the
    # einsum batch dim ((Bt*H, N, D) q/k/v) and drop the slice+concat below; at
    # D=4 the required (Bt,N,H,D)->(Bt,H,N,D) relayout costs more than it saves
    # and Mosaic transpose support for that permutation is limited.
    head_outs = []
    for h in range(H):
        q = qkv[:, :, h * D:(h + 1) * D].astype(jnp.bfloat16)            # (Bt,N,D)
        k = qkv[:, :, C + h * D:C + (h + 1) * D].astype(jnp.bfloat16)    # (Bt,N,D)
        v = qkv[:, :, 2 * C + h * D:2 * C + (h + 1) * D].astype(jnp.bfloat16)

        # Scale already folded into the q-columns of w_qkv by the wrapper.
        s = jnp.einsum("bqd,bkd->bqk", q, k,
                       preferred_element_type=jnp.float32)               # (Bt,N,N)
        s = s - jnp.max(s, axis=-1, keepdims=True)
        p = jnp.exp(s)                                   # f32 (v5e: no bf16 VPU/EUP)
        denom = jnp.sum(p, axis=-1, keepdims=True)       # f32 row-sum

        o_h = jnp.einsum("bqk,bkd->bqd", p.astype(jnp.bfloat16), v,
                         preferred_element_type=jnp.float32)             # (Bt,N,D)
        # Deferred softmax normalization: scale the (Bt,N,D) head output instead
        # of dividing the (Bt,N,N) score tile; exact reciprocal, f32 denominator.
        head_outs.append(o_h * pl.reciprocal(denom, approx=False))

    # Merge heads along lanes -> (R, C), already in (B, N, H*D) order, so it
    # feeds the output projection with no transpose.
    o_cat = jnp.concatenate(head_outs, axis=-1).reshape(R, C)            # f32

    # ---- output projection (bf16 operands, f32 accumulate) + bias.
    out = jnp.dot(o_cat.astype(jnp.bfloat16), wproj_ref[...],
                  preferred_element_type=jnp.float32)                    # (R,C)
    out = out + bproj_ref[...]
    o_ref[...] = out.reshape(Bt, N, C).astype(o_ref.dtype)


# -------------------------------- Wrapper ------------------------------------ #

def _pick_batch_tile(B, N, target_rows=512, min_steps=8):
    """How many batch elements to pack per grid step.

    Big enough that the qkv / proj matmuls see 128+-row MXU tiles and the
    per-step grid overhead is amortized, but (when B allows) keeping at least
    `min_steps` grid steps so the BlockSpec pipeline has future blocks to
    prefetch (matters most with v7x's two TensorCores).
    """
    divisors = [d for d in range(1, B + 1) if B % d == 0]
    fitting = [d for d in divisors if d * N <= target_rows] or divisors[:1]
    bt = fitting[-1]
    backed_off = [d for d in fitting if B // d >= min_steps]
    if backed_off:
        bt = backed_off[-1]
    return bt


def attention_forward(x, params, num_heads):
    """Pallas equivalent of Attention.forward. x: (B, N, C) -> (B, N, C)."""
    B, N, C = x.shape
    assert C % num_heads == 0
    head_dim = C // num_heads
    scale = head_dim ** (-0.5)

    # Param prep (free, traced once):
    #  * fold the softmax scale into the q-columns of w_qkv,
    #  * store both weight matrices as bf16 in HBM (MXU fast path, half the
    #    weight DMA bytes); bias stays f32.
    w_qkv = params["w_qkv"]                                   # (C, 3C), x @ W layout
    w_qkv = jnp.concatenate([w_qkv[:, :C] * scale, w_qkv[:, C:]], axis=1)
    w_qkv = w_qkv.astype(jnp.bfloat16)
    w_proj = params["w_proj"].astype(jnp.bfloat16)            # (C, C)
    b_proj = params["b_proj"].reshape(1, C).astype(jnp.float32)

    bt = _pick_batch_tile(B, N)
    grid = (B // bt,)

    kernel = functools.partial(_fused_attention_kernel, num_heads=num_heads)

    # TODO(synk): at production sizes (large N, C >= 128) tile N with a
    # flash-style online softmax, set pltpu.CompilerParams(vmem_limit_bytes=...)
    # explicitly (budget ~48 MiB against v7x's 64 MiB VMEM; 128-aligned tiles
    # and f32 elementwise math on v5e), and single-buffer the constant-index
    # weight specs (pipeline_mode=pl.Buffered(1)) to reclaim VMEM for bigger
    # row tiles.
    # TODO(synk): if production C stays < 128, present x/out to the kernel as
    # (B, N*C//128, 128) so stores are unmasked full-lane vst.
    return pl.pallas_call(
        kernel,
        out_shape=jax.ShapeDtypeStruct((B, N, C), x.dtype),
        grid=grid,
        in_specs=[
            pl.BlockSpec((bt, N, C), lambda b: (b, 0, 0)),    # x: Bt-batch tile
            pl.BlockSpec((C, 3 * C), lambda b: (0, 0)),       # w_qkv (bf16, full)
            pl.BlockSpec((C, C), lambda b: (0, 0)),           # w_proj (bf16, full)
            pl.BlockSpec((1, C), lambda b: (0, 0)),           # b_proj (f32, full)
        ],
        out_specs=pl.BlockSpec((bt, N, C), lambda b: (b, 0, 0)),
        compiler_params=pltpu.CompilerParams(
            dimension_semantics=("parallel",),                # batch across TCs (v7x)
        ),
    )(x, w_qkv, w_proj, b_proj)


# ------------------------------- Reference ----------------------------------- #

def attention_reference(x, params, num_heads):
    B, N, C = x.shape
    head_dim = C // num_heads
    scale = head_dim ** (-0.5)
    qkv = x.reshape(B * N, C) @ params["w_qkv"]
    qkv = qkv.reshape(B, N, 3, num_heads, head_dim)
    qkv = jnp.transpose(qkv, (2, 0, 3, 1, 4))
    q, k, v = qkv[0], qkv[1], qkv[2]
    s = jnp.einsum("bhqd,bhkd->bhqk", q, k) * scale
    p = jax.nn.softmax(s, axis=-1)
    o = jnp.einsum("bhqk,bhkd->bhqd", p, v)
    o = jnp.transpose(o, (0, 2, 1, 3)).reshape(B, N, C)
    return o @ params["w_proj"] + params["b_proj"]


# --------------------------------- Main -------------------------------------- #

if __name__ == "__main__":
    B, N, C = 2, 16, 32
    NUM_HEADS = 8

    key = jax.random.PRNGKey(0)
    kx, kqkv, kproj, kb = jax.random.split(key, 4)

    x = jax.random.normal(kx, (B, N, C), dtype=jnp.float32)
    params = {
        # nn.Linear(dim, dim*3, bias=False): applied here as x @ w_qkv
        # (PyTorch stores (out, in); transpose/reorder when porting real
        # checkpoints exactly as documented in the kernel docstring).
        "w_qkv": jax.random.normal(kqkv, (C, 3 * C), dtype=jnp.float32) * 0.05,
        # nn.Linear(dim, dim): x @ w_proj + b_proj
        "w_proj": jax.random.normal(kproj, (C, C), dtype=jnp.float32) * 0.05,
        "b_proj": jax.random.normal(kb, (C,), dtype=jnp.float32) * 0.05,
    }

    out = jax.block_until_ready(attention_forward(x, params, NUM_HEADS))
    ref = jax.block_until_ready(attention_reference(x, params, NUM_HEADS))

    assert out.shape == (B, N, C), out.shape
    max_err = float(jnp.max(jnp.abs(out - ref)))
    # Tolerance reflects bf16 MXU operands (per perf review); observed error at
    # these magnitudes is a few 1e-3.
    assert jnp.allclose(out, ref, atol=2e-2, rtol=2e-2), max_err
    print("KERNEL_OK")
</pallas_src>

<mosaic_0001>
module attributes {stable_mosaic.version = 11 : i64} {
  func.func @_fused_attention_kernel(%arg0: i32, %arg1: memref<2x16x32xf32, #tpu.memory_space<vmem>>, %arg2: memref<32x96xbf16, #tpu.memory_space<vmem>>, %arg3: memref<32x32xbf16, #tpu.memory_space<vmem>>, %arg4: memref<1x32xf32, #tpu.memory_space<vmem>>, %arg5: memref<2x16x32xf32, #tpu.memory_space<vmem>>) attributes {dimension_semantics = [#tpu.dimension_semantics<parallel>], iteration_bounds = array<i64: 1>, scalar_prefetch = 0 : i64, scratch_operands = 0 : i64, tpu.core_type = #tpu.core_type<tc>, window_params = [{transform_indices = @transform_0, window_bounds = array<i64: 2, 16, 32>}, {pipeline_mode = #tpu.pipeline_mode<synchronous>, transform_indices = @transform_1, window_bounds = array<i64: 32, 96>}, {pipeline_mode = #tpu.pipeline_mode<synchronous>, transform_indices = @transform_2, window_bounds = array<i64: 32, 32>}, {pipeline_mode = #tpu.pipeline_mode<synchronous>, transform_indices = @transform_3, window_bounds = array<i64: 1, 32>}, {transform_indices = @transform_4, window_bounds = array<i64: 2, 16, 32>}]} {
    %c0 = arith.constant 0 : index
    %c0_0 = arith.constant 0 : index
    %c0_1 = arith.constant 0 : index
    %0 = vector.load %arg1[%c0, %c0_0, %c0_1] : memref<2x16x32xf32, #tpu.memory_space<vmem>>, vector<2x16x32xf32>
    %1 = vector.shape_cast %0 : vector<2x16x32xf32> to vector<32x32xf32>
    %2 = arith.truncf %1 : vector<32x32xf32> to vector<32x32xbf16>
    %c0_2 = arith.constant 0 : index
    %c0_3 = arith.constant 0 : index
    %3 = vector.load %arg2[%c0_2, %c0_3] : memref<32x96xbf16, #tpu.memory_space<vmem>>, vector<32x96xbf16>
    %cst = arith.constant dense<0.000000e+00> : vector<32x96xf32>
    %4 = tpu.matmul %2, %3, %cst {dimension_numbers = #tpu.dot_dimension_numbers<[1], [0], [0], [1], [0, 0, 1, 1], [], []>} : vector<32x32xbf16>, vector<32x96xbf16>, vector<32x96xf32> -> vector<32x96xf32>
    %5 = vector.shape_cast %4 : vector<32x96xf32> to vector<2x16x96xf32>
    %6 = vector.extract_strided_slice %5 {offsets = [0, 0, 0], sizes = [2, 16, 4], strides = [1, 1, 1]} : vector<2x16x96xf32> to vector<2x16x4xf32>
    %7 = arith.truncf %6 : vector<2x16x4xf32> to vector<2x16x4xbf16>
    %8 = vector.extract_strided_slice %5 {offsets = [0, 0, 32], sizes = [2, 16, 4], strides = [1, 1, 1]} : vector<2x16x96xf32> to vector<2x16x4xf32>
    %9 = arith.truncf %8 : vector<2x16x4xf32> to vector<2x16x4xbf16>
    %10 = vector.extract_strided_slice %5 {offsets = [0, 0, 64], sizes = [2, 16, 4], strides = [1, 1, 1]} : vector<2x16x96xf32> to vector<2x16x4xf32>
    %11 = arith.truncf %10 : vector<2x16x4xf32> to vector<2x16x4xbf16>
    "tpu.trace_start"() <{level = 10 : i32, message = "bqd,bkd->bqk"}> : () -> ()
    %cst_4 = arith.constant dense<0.000000e+00> : vector<2x16x16xf32>
    %12 = tpu.matmul %7, %9, %cst_4 {dimension_numbers = #tpu.dot_dimension_numbers<[2], [2], [1], [1], [0, 0, 0, 1, 1, 1], [0], [0]>} : vector<2x16x4xbf16>, vector<2x16x4xbf16>, vector<2x16x16xf32> -> vector<2x16x16xf32>
    "tpu.trace_stop"() : () -> ()
    %cst_5 = arith.constant dense<0xFF800000> : vector<2x16xf32>
    %13 = vector.multi_reduction <maximumf>, %12, %cst_5 [2] : vector<2x16x16xf32> to vector<2x16xf32>
    %14 = vector.shape_cast %13 : vector<2x16xf32> to vector<2x16x1xf32>
    %15 = vector.broadcast %14 : vector<2x16x1xf32> to vector<2x16x16xf32>
    %16 = arith.subf %12, %15 : vector<2x16x16xf32>
    %17 = math.exp %16 : vector<2x16x16xf32>
    %cst_6 = arith.constant dense<0.000000e+00> : vector<2x16xf32>
    %18 = vector.multi_reduction <add>, %17, %cst_6 [2] : vector<2x16x16xf32> to vector<2x16xf32>
    %19 = vector.shape_cast %18 : vector<2x16xf32> to vector<2x16x1xf32>
    %20 = arith.truncf %17 : vector<2x16x16xf32> to vector<2x16x16xbf16>
    "tpu.trace_start"() <{level = 10 : i32, message = "bqk,bkd->bqd"}> : () -> ()
    %cst_7 = arith.constant dense<0.000000e+00> : vector<2x16x4xf32>
    %21 = tpu.matmul %20, %11, %cst_7 {dimension_numbers = #tpu.dot_dimension_numbers<[2], [1], [1], [2], [0, 0, 0, 1, 1, 2], [0], [0]>} : vector<2x16x16xbf16>, vector<2x16x4xbf16>, vector<2x16x4xf32> -> vector<2x16x4xf32>
    "tpu.trace_stop"() : () -> ()
    %22 = tpu.reciprocal %19 : vector<2x16x1xf32> -> vector<2x16x1xf32>
    %23 = vector.broadcast %22 : vector<2x16x1xf32> to vector<2x16x4xf32>
    %24 = arith.mulf %21, %23 : vector<2x16x4xf32>
    %25 = vector.extract_strided_slice %5 {offsets = [0, 0, 4], sizes = [2, 16, 4], strides = [1, 1, 1]} : vector<2x16x96xf32> to vector<2x16x4xf32>
    %26 = arith.truncf %25 : vector<2x16x4xf32> to vector<2x16x4xbf16>
    %27 = vector.extract_strided_slice %5 {offsets = [0, 0, 36], sizes = [2, 16, 4], strides = [1, 1, 1]} : vector<2x16x96xf32> to vector<2x16x4xf32>
    %28 = arith.truncf %27 : vector<2x16x4xf32> to vector<2x16x4xbf16>
    %29 = vector.extract_strided_slice %5 {offsets = [0, 0, 68], sizes = [2, 16, 4], strides = [1, 1, 1]} : vector<2x16x96xf32> to vector<2x16x4xf32>
    %30 = arith.truncf %29 : vector<2x16x4xf32> to vector<2x16x4xbf16>
    "tpu.trace_start"() <{level = 10 : i32, message = "bqd,bkd->bqk"}> : () -> ()
    %cst_8 = arith.constant dense<0.000000e+00> : vector<2x16x16xf32>
    %31 = tpu.matmul %26, %28, %cst_8 {dimension_numbers = #tpu.dot_dimension_numbers<[2], [2], [1], [1], [0, 0, 0, 1, 1, 1], [0], [0]>} : vector<2x16x4xbf16>, vector<2x16x4xbf16>, vector<2x16x16xf32> -> vector<2x16x16xf32>
    "tpu.trace_stop"() : () -> ()
    %cst_9 = arith.constant dense<0xFF800000> : vector<2x16xf32>
    %32 = vector.multi_reduction <maximumf>, %31, %cst_9 [2] : vector<2x16x16xf32> to vector<2x16xf32>
    %33 = vector.shape_cast %32 : vector<2x16xf32> to vector<2x16x1xf32>
    %34 = vector.broadcast %33 : vector<2x16x1xf32> to vector<2x16x16xf32>
    %35 = arith.subf %31, %34 : vector<2x16x16xf32>
    %36 = math.exp %35 : vector<2x16x16xf32>
    %cst_10 = arith.constant dense<0.000000e+00> : vector<2x16xf32>
    %37 = vector.multi_reduction <add>, %36, %cst_10 [2] : vector<2x16x16xf32> to vector<2x16xf32>
    %38 = vector.shape_cast %37 : vector<2x16xf32> to vector<2x16x1xf32>
    %39 = arith.truncf %36 : vector<2x16x16xf32> to vector<2x16x16xbf16>
    "tpu.trace_start"() <{level = 10 : i32, message = "bqk,bkd->bqd"}> : () -> ()
    %cst_11 = arith.constant dense<0.000000e+00> : vector<2x16x4xf32>
    %40 = tpu.matmul %39, %30, %cst_11 {dimension_numbers = #tpu.dot_dimension_numbers<[2], [1], [1], [2], [0, 0, 0, 1, 1, 2], [0], [0]>} : vector<2x16x16xbf16>, vector<2x16x4xbf16>, vector<2x16x4xf32> -> vector<2x16x4xf32>
    "tpu.trace_stop"() : () -> ()
    %41 = tpu.reciprocal %38 : vector<2x16x1xf32> -> vector<2x16x1xf32>
    %42 = vector.broadcast %41 : vector<2x16x1xf32> to vector<2x16x4xf32>
    %43 = arith.mulf %40, %42 : vector<2x16x4xf32>
    %44 = vector.extract_strided_slice %5 {offsets = [0, 0, 8], sizes = [2, 16, 4], strides = [1, 1, 1]} : vector<2x16x96xf32> to vector<2x16x4xf32>
    %45 = arith.truncf %44 : vector<2x16x4xf32> to vector<2x16x4xbf16>
    %46 = vector.extract_strided_slice %5 {offsets = [0, 0, 40], sizes = [2, 16, 4], strides = [1, 1, 1]} : vector<2x16x96xf32> to vector<2x16x4xf32>
    %47 = arith.truncf %46 : vector<2x16x4xf32> to vector<2x16x4xbf16>
    %48 = vector.extract_strided_slice %5 {offsets = [0, 0, 72], sizes = [2, 16, 4], strides = [1, 1, 1]} : vector<2x16x96xf32> to vector<2x16x4xf32>
    %49 = arith.truncf %48 : vector<2x16x4xf32> to vector<2x16x4xbf16>
    "tpu.trace_start"() <{level = 10 : i32, message = "bqd,bkd->bqk"}> : () -> ()
    %cst_12 = arith.constant dense<0.000000e+00> : vector<2x16x16xf32>
    %50 = tpu.matmul %45, %47, %cst_12 {dimension_numbers = #tpu.dot_dimension_numbers<[2], [2], [1], [1], [0, 0, 0, 1, 1, 1], [0], [0]>} : vector<2x16x4xbf16>, vector<2x16x4xbf16>, vector<2x16x16xf32> -> vector<2x16x16xf32>
    "tpu.trace_stop"() : () -> ()
    %cst_13 = arith.constant dense<0xFF800000> : vector<2x16xf32>
    %51 = vector.multi_reduction <maximumf>, %50, %cst_13 [2] : vector<2x16x16xf32> to vector<2x16xf32>
    %52 = vector.shape_cast %51 : vector<2x16xf32> to vector<2x16x1xf32>
    %53 = vector.broadcast %52 : vector<2x16x1xf32> to vector<2x16x16xf32>
    %54 = arith.subf %50, %53 : vector<2x16x16xf32>
    %55 = math.exp %54 : vector<2x16x16xf32>
    %cst_14 = arith.constant dense<0.000000e+00> : vector<2x16xf32>
    %56 = vector.multi_reduction <add>, %55, %cst_14 [2] : vector<2x16x16xf32> to vector<2x16xf32>
    %57 = vector.shape_cast %56 : vector<2x16xf32> to vector<2x16x1xf32>
    %58 = arith.truncf %55 : vector<2x16x16xf32> to vector<2x16x16xbf16>
    "tpu.trace_start"() <{level = 10 : i32, message = "bqk,bkd->bqd"}> : () -> ()
    %cst_15 = arith.constant dense<0.000000e+00> : vector<2x16x4xf32>
    %59 = tpu.matmul %58, %49, %cst_15 {dimension_numbers = #tpu.dot_dimension_numbers<[2], [1], [1], [2], [0, 0, 0, 1, 1, 2], [0], [0]>} : vector<2x16x16xbf16>, vector<2x16x4xbf16>, vector<2x16x4xf32> -> vector<2x16x4xf32>
    "tpu.trace_stop"() : () -> ()
    %60 = tpu.reciprocal %57 : vector<2x16x1xf32> -> vector<2x16x1xf32>
    %61 = vector.broadcast %60 : vector<2x16x1xf32> to vector<2x16x4xf32>
    %62 = arith.mulf %59, %61 : vector<2x16x4xf32>
    %63 = vector.extract_strided_slice %5 {offsets = [0, 0, 12], sizes = [2, 16, 4], strides = [1, 1, 1]} : vector<2x16x96xf32> to vector<2x16x4xf32>
    %64 = arith.truncf %63 : vector<2x16x4xf32> to vector<2x16x4xbf16>
    %65 = vector.extract_strided_slice %5 {offsets = [0, 0, 44], sizes = [2, 16, 4], strides = [1, 1, 1]} : vector<2x16x96xf32> to vector<2x16x4xf32>
    %66 = arith.truncf %65 : vector<2x16x4xf32> to vector<2x16x4xbf16>
    %67 = vector.extract_strided_slice %5 {offsets = [0, 0, 76], sizes = [2, 16, 4], strides = [1, 1, 1]} : vector<2x16x96xf32> to vector<2x16x4xf32>
    %68 = arith.truncf %67 : vector<2x16x4xf32> to vector<2x16x4xbf16>
    "tpu.trace_start"() <{level = 10 : i32, message = "bqd,bkd->bqk"}> : () -> ()
    %cst_16 = arith.constant dense<0.000000e+00> : vector<2x16x16xf32>
    %69 = tpu.matmul %64, %66, %cst_16 {dimension_numbers = #tpu.dot_dimension_numbers<[2], [2], [1], [1], [0, 0, 0, 1, 1, 1], [0], [0]>} : vector<2x16x4xbf16>, vector<2x16x4xbf16>, vector<2x16x16xf32> -> vector<2x16x16xf32>
    "tpu.trace_stop"() : () -> ()
    %cst_17 = arith.constant dense<0xFF800000> : vector<2x16xf32>
    %70 = vector.multi_reduction <maximumf>, %69, %cst_17 [2] : vector<2x16x16xf32> to vector<2x16xf32>
    %71 = vector.shape_cast %70 : vector<2x16xf32> to vector<2x16x1xf32>
    %72 = vector.broadcast %71 : vector<2x16x1xf32> to vector<2x16x16xf32>
    %73 = arith.subf %69, %72 : vector<2x16x16xf32>
    %74 = math.exp %73 : vector<2x16x16xf32>
    %cst_18 = arith.constant dense<0.000000e+00> : vector<2x16xf32>
    %75 = vector.multi_reduction <add>, %74, %cst_18 [2] : vector<2x16x16xf32> to vector<2x16xf32>
    %76 = vector.shape_cast %75 : vector<2x16xf32> to vector<2x16x1xf32>
    %77 = arith.truncf %74 : vector<2x16x16xf32> to vector<2x16x16xbf16>
    "tpu.trace_start"() <{level = 10 : i32, message = "bqk,bkd->bqd"}> : () -> ()
    %cst_19 = arith.constant dense<0.000000e+00> : vector<2x16x4xf32>
    %78 = tpu.matmul %77, %68, %cst_19 {dimension_numbers = #tpu.dot_dimension_numbers<[2], [1], [1], [2], [0, 0, 0, 1, 1, 2], [0], [0]>} : vector<2x16x16xbf16>, vector<2x16x4xbf16>, vector<2x16x4xf32> -> vector<2x16x4xf32>
    "tpu.trace_stop"() : () -> ()
    %79 = tpu.reciprocal %76 : vector<2x16x1xf32> -> vector<2x16x1xf32>
    %80 = vector.broadcast %79 : vector<2x16x1xf32> to vector<2x16x4xf32>
    %81 = arith.mulf %78, %80 : vector<2x16x4xf32>
    %82 = vector.extract_strided_slice %5 {offsets = [0, 0, 16], sizes = [2, 16, 4], strides = [1, 1, 1]} : vector<2x16x96xf32> to vector<2x16x4xf32>
    %83 = arith.truncf %82 : vector<2x16x4xf32> to vector<2x16x4xbf16>
    %84 = vector.extract_strided_slice %5 {offsets = [0, 0, 48], sizes = [2, 16, 4], strides = [1, 1, 1]} : vector<2x16x96xf32> to vector<2x16x4xf32>
    %85 = arith.truncf %84 : vector<2x16x4xf32> to vector<2x16x4xbf16>
    %86 = vector.extract_strided_slice %5 {offsets = [0, 0, 80], sizes = [2, 16, 4], strides = [1, 1, 1]} : vector<2x16x96xf32> to vector<2x16x4xf32>
    %87 = arith.truncf %86 : vector<2x16x4xf32> to vector<2x16x4xbf16>
    "tpu.trace_start"() <{level = 10 : i32, message = "bqd,bkd->bqk"}> : () -> ()
    %cst_20 = arith.constant dense<0.000000e+00> : vector<2x16x16xf32>
    %88 = tpu.matmul %83, %85, %cst_20 {dimension_numbers = #tpu.dot_dimension_numbers<[2], [2], [1], [1], [0, 0, 0, 1, 1, 1], [0], [0]>} : vector<2x16x4xbf16>, vector<2x16x4xbf16>, vector<2x16x16xf32> -> vector<2x16x16xf32>
    "tpu.trace_stop"() : () -> ()
    %cst_21 = arith.constant dense<0xFF800000> : vector<2x16xf32>
    %89 = vector.multi_reduction <maximumf>, %88, %cst_21 [2] : vector<2x16x16xf32> to vector<2x16xf32>
    %90 = vector.shape_cast %89 : vector<2x16xf32> to vector<2x16x1xf32>
    %91 = vector.broadcast %90 : vector<2x16x1xf32> to vector<2x16x16xf32>
    %92 = arith.subf %88, %91 : vector<2x16x16xf32>
    %93 = math.exp %92 : vector<2x16x16xf32>
    %cst_22 = arith.constant dense<0.000000e+00> : vector<2x16xf32>
    %94 = vector.multi_reduction <add>, %93, %cst_22 [2] : vector<2x16x16xf32> to vector<2x16xf32>
    %95 = vector.shape_cast %94 : vector<2x16xf32> to vector<2x16x1xf32>
    %96 = arith.truncf %93 : vector<2x16x16xf32> to vector<2x16x16xbf16>
    "tpu.trace_start"() <{level = 10 : i32, message = "bqk,bkd->bqd"}> : () -> ()
    %cst_23 = arith.constant dense<0.000000e+00> : vector<2x16x4xf32>
    %97 = tpu.matmul %96, %87, %cst_23 {dimension_numbers = #tpu.dot_dimension_numbers<[2], [1], [1], [2], [0, 0, 0, 1, 1, 2], [0], [0]>} : vector<2x16x16xbf16>, vector<2x16x4xbf16>, vector<2x16x4xf32> -> vector<2x16x4xf32>
    "tpu.trace_stop"() : () -> ()
    %98 = tpu.reciprocal %95 : vector<2x16x1xf32> -> vector<2x16x1xf32>
    %99 = vector.broadcast %98 : vector<2x16x1xf32> to vector<2x16x4xf32>
    %100 = arith.mulf %97, %99 : vector<2x16x4xf32>
    %101 = vector.extract_strided_slice %5 {offsets = [0, 0, 20], sizes = [2, 16, 4], strides = [1, 1, 1]} : vector<2x16x96xf32> to vector<2x16x4xf32>
    %102 = arith.truncf %101 : vector<2x16x4xf32> to vector<2x16x4xbf16>
    %103 = vector.extract_strided_slice %5 {offsets = [0, 0, 52], sizes = [2, 16, 4], strides = [1, 1, 1]} : vector<2x16x96xf32> to vector<2x16x4xf32>
    %104 = arith.truncf %103 : vector<2x16x4xf32> to vector<2x16x4xbf16>
    %105 = vector.extract_strided_slice %5 {offsets = [0, 0, 84], sizes = [2, 16, 4], strides = [1, 1, 1]} : vector<2x16x96xf32> to vector<2x16x4xf32>
    %106 = arith.truncf %105 : vector<2x16x4xf32> to vector<2x16x4xbf16>
    "tpu.trace_start"() <{level = 10 : i32, message = "bqd,bkd->bqk"}> : () -> ()
    %cst_24 = arith.constant dense<0.000000e+00> : vector<2x16x16xf32>
    %107 = tpu.matmul %102, %104, %cst_24 {dimension_numbers = #tpu.dot_dimension_numbers<[2], [2], [1], [1], [0, 0, 0, 1, 1, 1], [0], [0]>} : vector<2x16x4xbf16>, vector<2x16x4xbf16>, vector<2x16x16xf32> -> vector<2x16x16xf32>
    "tpu.trace_stop"() : () -> ()
    %cst_25 = arith.constant dense<0xFF800000> : vector<2x16xf32>
    %108 = vector.multi_reduction <maximumf>, %107, %cst_25 [2] : vector<2x16x16xf32> to vector<2x16xf32>
    %109 = vector.shape_cast %108 : vector<2x16xf32> to vector<2x16x1xf32>
    %110 = vector.broadcast %109 : vector<2x16x1xf32> to vector<2x16x16xf32>
    %111 = arith.subf %107, %110 : vector<2x16x16xf32>
    %112 = math.exp %111 : vector<2x16x16xf32>
    %cst_26 = arith.constant dense<0.000000e+00> : vector<2x16xf32>
    %113 = vector.multi_reduction <add>, %112, %cst_26 [2] : vector<2x16x16xf32> to vector<2x16xf32>
    %114 = vector.shape_cast %113 : vector<2x16xf32> to vector<2x16x1xf32>
    %115 = arith.truncf %112 : vector<2x16x16xf32> to vector<2x16x16xbf16>
    "tpu.trace_start"() <{level = 10 : i32, message = "bqk,bkd->bqd"}> : () -> ()
    %cst_27 = arith.constant dense<0.000000e+00> : vector<2x16x4xf32>
    %116 = tpu.matmul %115, %106, %cst_27 {dimension_numbers = #tpu.dot_dimension_numbers<[2], [1], [1], [2], [0, 0, 0, 1, 1, 2], [0], [0]>} : vector<2x16x16xbf16>, vector<2x16x4xbf16>, vector<2x16x4xf32> -> vector<2x16x4xf32>
    "tpu.trace_stop"() : () -> ()
    %117 = tpu.reciprocal %114 : vector<2x16x1xf32> -> vector<2x16x1xf32>
    %118 = vector.broadcast %117 : vector<2x16x1xf32> to vector<2x16x4xf32>
    %119 = arith.mulf %116, %118 : vector<2x16x4xf32>
    %120 = vector.extract_strided_slice %5 {offsets = [0, 0, 24], sizes = [2, 16, 4], strides = [1, 1, 1]} : vector<2x16x96xf32> to vector<2x16x4xf32>
    %121 = arith.truncf %120 : vector<2x16x4xf32> to vector<2x16x4xbf16>
    %122 = vector.extract_strided_slice %5 {offsets = [0, 0, 56], sizes = [2, 16, 4], strides = [1, 1, 1]} : vector<2x16x96xf32> to vector<2x16x4xf32>
    %123 = arith.truncf %122 : vector<2x16x4xf32> to vector<2x16x4xbf16>
    %124 = vector.extract_strided_slice %5 {offsets = [0, 0, 88], sizes = [2, 16, 4], strides = [1, 1, 1]} : vector<2x16x96xf32> to vector<2x16x4xf32>
    %125 = arith.truncf %124 : vector<2x16x4xf32> to vector<2x16x4xbf16>
    "tpu.trace_start"() <{level = 10 : i32, message = "bqd,bkd->bqk"}> : () -> ()
    %cst_28 = arith.constant dense<0.000000e+00> : vector<2x16x16xf32>
    %126 = tpu.matmul %121, %123, %cst_28 {dimension_numbers = #tpu.dot_dimension_numbers<[2], [2], [1], [1], [0, 0, 0, 1, 1, 1], [0], [0]>} : vector<2x16x4xbf16>, vector<2x16x4xbf16>, vector<2x16x16xf32> -> vector<2x16x16xf32>
    "tpu.trace_stop"() : () -> ()
    %cst_29 = arith.constant dense<0xFF800000> : vector<2x16xf32>
    %127 = vector.multi_reduction <maximumf>, %126, %cst_29 [2] : vector<2x16x16xf32> to vector<2x16xf32>
    %128 = vector.shape_cast %127 : vector<2x16xf32> to vector<2x16x1xf32>
    %129 = vector.broadcast %128 : vector<2x16x1xf32> to vector<2x16x16xf32>
    %130 = arith.subf %126, %129 : vector<2x16x16xf32>
    %131 = math.exp %130 : vector<2x16x16xf32>
    %cst_30 = arith.constant dense<0.000000e+00> : vector<2x16xf32>
    %132 = vector.multi_reduction <add>, %131, %cst_30 [2] : vector<2x16x16xf32> to vector<2x16xf32>
    %133 = vector.shape_cast %132 : vector<2x16xf32> to vector<2x16x1xf32>
    %134 = arith.truncf %131 : vector<2x16x16xf32> to vector<2x16x16xbf16>
    "tpu.trace_start"() <{level = 10 : i32, message = "bqk,bkd->bqd"}> : () -> ()
    %cst_31 = arith.constant dense<0.000000e+00> : vector<2x16x4xf32>
    %135 = tpu.matmul %134, %125, %cst_31 {dimension_numbers = #tpu.dot_dimension_numbers<[2], [1], [1], [2], [0, 0, 0, 1, 1, 2], [0], [0]>} : vector<2x16x16xbf16>, vector<2x16x4xbf16>, vector<2x16x4xf32> -> vector<2x16x4xf32>
    "tpu.trace_stop"() : () -> ()
    %136 = tpu.reciprocal %133 : vector<2x16x1xf32> -> vector<2x16x1xf32>
    %137 = vector.broadcast %136 : vector<2x16x1xf32> to vector<2x16x4xf32>
    %138 = arith.mulf %135, %137 : vector<2x16x4xf32>
    %139 = vector.extract_strided_slice %5 {offsets = [0, 0, 28], sizes = [2, 16, 4], strides = [1, 1, 1]} : vector<2x16x96xf32> to vector<2x16x4xf32>
    %140 = arith.truncf %139 : vector<2x16x4xf32> to vector<2x16x4xbf16>
    %141 = vector.extract_strided_slice %5 {offsets = [0, 0, 60], sizes = [2, 16, 4], strides = [1, 1, 1]} : vector<2x16x96xf32> to vector<2x16x4xf32>
    %142 = arith.truncf %141 : vector<2x16x4xf32> to vector<2x16x4xbf16>
    %143 = vector.extract_strided_slice %5 {offsets = [0, 0, 92], sizes = [2, 16, 4], strides = [1, 1, 1]} : vector<2x16x96xf32> to vector<2x16x4xf32>
    %144 = arith.truncf %143 : vector<2x16x4xf32> to vector<2x16x4xbf16>
    "tpu.trace_start"() <{level = 10 : i32, message = "bqd,bkd->bqk"}> : () -> ()
    %cst_32 = arith.constant dense<0.000000e+00> : vector<2x16x16xf32>
    %145 = tpu.matmul %140, %142, %cst_32 {dimension_numbers = #tpu.dot_dimension_numbers<[2], [2], [1], [1], [0, 0, 0, 1, 1, 1], [0], [0]>} : vector<2x16x4xbf16>, vector<2x16x4xbf16>, vector<2x16x16xf32> -> vector<2x16x16xf32>
    "tpu.trace_stop"() : () -> ()
    %cst_33 = arith.constant dense<0xFF800000> : vector<2x16xf32>
    %146 = vector.multi_reduction <maximumf>, %145, %cst_33 [2] : vector<2x16x16xf32> to vector<2x16xf32>
    %147 = vector.shape_cast %146 : vector<2x16xf32> to vector<2x16x1xf32>
    %148 = vector.broadcast %147 : vector<2x16x1xf32> to vector<2x16x16xf32>
    %149 = arith.subf %145, %148 : vector<2x16x16xf32>
    %150 = math.exp %149 : vector<2x16x16xf32>
    %cst_34 = arith.constant dense<0.000000e+00> : vector<2x16xf32>
    %151 = vector.multi_reduction <add>, %150, %cst_34 [2] : vector<2x16x16xf32> to vector<2x16xf32>
    %152 = vector.shape_cast %151 : vector<2x16xf32> to vector<2x16x1xf32>
    %153 = arith.truncf %150 : vector<2x16x16xf32> to vector<2x16x16xbf16>
    "tpu.trace_start"() <{level = 10 : i32, message = "bqk,bkd->bqd"}> : () -> ()
    %cst_35 = arith.constant dense<0.000000e+00> : vector<2x16x4xf32>
    %154 = tpu.matmul %153, %144, %cst_35 {dimension_numbers = #tpu.dot_dimension_numbers<[2], [1], [1], [2], [0, 0, 0, 1, 1, 2], [0], [0]>} : vector<2x16x16xbf16>, vector<2x16x4xbf16>, vector<2x16x4xf32> -> vector<2x16x4xf32>
    "tpu.trace_stop"() : () -> ()
    %155 = tpu.reciprocal %152 : vector<2x16x1xf32> -> vector<2x16x1xf32>
    %156 = vector.broadcast %155 : vector<2x16x1xf32> to vector<2x16x4xf32>
    %157 = arith.mulf %154, %156 : vector<2x16x4xf32>
    %158 = tpu.concatenate %24, %43, %62, %81, %100, %119, %138, %157 in 2 : vector<2x16x4xf32>, vector<2x16x4xf32>, vector<2x16x4xf32>, vector<2x16x4xf32>, vector<2x16x4xf32>, vector<2x16x4xf32>, vector<2x16x4xf32>, vector<2x16x4xf32> -> vector<2x16x32xf32>
    %159 = vector.shape_cast %158 : vector<2x16x32xf32> to vector<32x32xf32>
    %160 = arith.truncf %159 : vector<32x32xf32> to vector<32x32xbf16>
    %c0_36 = arith.constant 0 : index
    %c0_37 = arith.constant 0 : index
    %161 = vector.load %arg3[%c0_36, %c0_37] : memref<32x32xbf16, #tpu.memory_space<vmem>>, vector<32x32xbf16>
    %cst_38 = arith.constant dense<0.000000e+00> : vector<32x32xf32>
    %162 = tpu.matmul %160, %161, %cst_38 {dimension_numbers = #tpu.dot_dimension_numbers<[1], [0], [0], [1], [0, 0, 1, 1], [], []>} : vector<32x32xbf16>, vector<32x32xbf16>, vector<32x32xf32> -> vector<32x32xf32>
    %c0_39 = arith.constant 0 : index
    %c0_40 = arith.constant 0 : index
    %163 = vector.load %arg4[%c0_39, %c0_40] : memref<1x32xf32, #tpu.memory_space<vmem>>, vector<1x32xf32>
    %164 = vector.broadcast %163 : vector<1x32xf32> to vector<32x32xf32>
    %165 = arith.addf %162, %164 : vector<32x32xf32>
    %166 = vector.shape_cast %165 : vector<32x32xf32> to vector<2x16x32xf32>
    %c0_41 = arith.constant 0 : index
    %c0_42 = arith.constant 0 : index
    %c0_43 = arith.constant 0 : index
    %167 = vector.load %arg5[%c0_41, %c0_42, %c0_43] : memref<2x16x32xf32, #tpu.memory_space<vmem>>, vector<2x16x32xf32>
    tpu.vector_store %arg5[%c0_41, %c0_42, %c0_43], %166 {strides = array<i32>} : memref<2x16x32xf32, #tpu.memory_space<vmem>>, vector<2x16x32xf32>,
    return
  }
  func.func @transform_0(%arg0: i32) -> (i32, i32, i32) {
    %c0_i32 = arith.constant 0 : i32
    %c0_i32_0 = arith.constant 0 : i32
    %c0_i32_1 = arith.constant 0 : i32
    return %arg0, %c0_i32, %c0_i32_0 : i32, i32, i32
  }
  func.func @transform_1(%arg0: i32) -> (i32, i32) {
    %c0_i32 = arith.constant 0 : i32
    %c0_i32_0 = arith.constant 0 : i32
    %c0_i32_1 = arith.constant 0 : i32
    return %c0_i32, %c0_i32_0 : i32, i32
  }
  func.func @transform_2(%arg0: i32) -> (i32, i32) {
    %c0_i32 = arith.constant 0 : i32
    %c0_i32_0 = arith.constant 0 : i32
    %c0_i32_1 = arith.constant 0 : i32
    return %c0_i32, %c0_i32_0 : i32, i32
  }
  func.func @transform_3(%arg0: i32) -> (i32, i32) {
    %c0_i32 = arith.constant 0 : i32
    %c0_i32_0 = arith.constant 0 : i32
    %c0_i32_1 = arith.constant 0 : i32
    return %c0_i32, %c0_i32_0 : i32, i32
  }
  func.func @transform_4(%arg0: i32) -> (i32, i32, i32) {
    %c0_i32 = arith.constant 0 : i32
    %c0_i32_0 = arith.constant 0 : i32
    %c0_i32_1 = arith.constant 0 : i32
    return %arg0, %c0_i32, %c0_i32_0 : i32, i32, i32
  }
}

</mosaic_0001>

<bundles_post_ra>
// kernel: tpu_custom_call.1
= control target key start
LH: loop header
LB: loop body
LE: loop exit
PB: predicated region body
PF: predicated region fallthrough
CT: control target
= control target key end

     0   :  { %9 = vsyncpa [#allocation3], 0  ;;  %s3600_s0 = inlined_call_operand.hbm [shape: f32[2,16,32], index: 0, kind: input, shape index: {}]   ;;  %s3601_s1 = inlined_call_operand.hbm [shape: bf16[32,96], index: 1, kind: input, shape index: {}]   ;;  %s3602_s2 = inlined_call_operand.hbm [shape: bf16[32,32], index: 2, kind: input, shape index: {}]   ;;  %s3603_s3 = inlined_call_operand.vmem [shape: f32[1,32], index: 3, kind: input, shape index: {}]   ;;  %s3604_s4 = inlined_call_operand.hbm [shape: f32[2,16,32], index: 4, kind: output, shape index: {}]  }
   0x1   :  { %10 = vsyncpa [#allocation6], 0 }
   0x2   :  { %11 = vsyncpa [#allocation4], 0  ;;  %s2969_s15 = smov [#allocation5]  }
   0x3   :  { %s29_s16 = sshll.u32 %s2969_s15, 4  ;;  %s30_s16 = int_to_ptr.vmem [resolvable:$true] %s29_s16 }
   0x4   :  { %s2891_s17 = scalar_lea.vmem %s30_s16, 256  ;;  %p2896_p1 = scmp.lt.s32.totalorder %s30_s16, %s30_s16 }
   0x5   :  { %p2892_p0 = scmp.ne.s32.totalorder %s30_s16, %s2891_s17  ;;  %p2897_p2 = scmp.lt.s32.totalorder %s2891_s17, %s2891_s17 }
   0x7   :  { %p2898_p3 = por %p2897_p2, %p2896_p1 }
   0x9   :  { %p2899_p4 = pnand %p2898_p3, %p2892_p0 }
   0xb   :  { %2902 = shalt.err (!%p2899_p4)
}
   0xc   :  { %s2970_s18 = smov 64   ;;  %s2971_s19 = smov 4  }
   0xd   :  { %35 = dma.hbm_to_vmem [thread:$0]  %s3601_s1, 256, %s30_s16, [#allocation6], %s2970_s18, %s2970_s18, %s2971_s19  }
   0xe   :  { %s2972_s22 = smov [#allocation2]  }
   0xf   :  { %s17_s23 = sshll.u32 %s2972_s22, 4  ;;  %s18_s23 = int_to_ptr.vmem [resolvable:$true] %s17_s23 }
  0x10   :  { %s2911_s24 = scalar_lea.vmem %s18_s23, 512  ;;  %p2916_p6 = scmp.lt.s32.totalorder %s18_s23, %s18_s23 }
  0x11   :  { %p2912_p5 = scmp.ne.s32.totalorder %s18_s23, %s2911_s24  ;;  %p2917_p7 = scmp.lt.s32.totalorder %s2911_s24, %s2911_s24 }
  0x13   :  { %p2918_p8 = por %p2917_p7, %p2916_p6 }
  0x15   :  { %p2919_p9 = pnand %p2918_p8, %p2912_p5 }
  0x17   :  { %2922 = shalt.err (!%p2919_p9)
}
  0x18   :  { %s2973_s25 = smov 128   ;;  %s2974_s26 = smov 8  }
  0x19   :  { %23 = dma.hbm_to_vmem [thread:$0]  %s3600_s0, 512, %s18_s23, [#allocation3], %s2973_s25, %s2973_s25, %s2974_s26  }
  0x1a   :  { %s2975_s1 = smov [#allocation7]  }
  0x1b   :  { %s41_s29 = sshll.u32 %s2975_s1, 4  ;;  %s42_s29 = int_to_ptr.vmem [resolvable:$true] %s41_s29 }
  0x1c   :  { %s2931_s30 = scalar_lea.vmem %s42_s29, 256  ;;  %p2936_p11 = scmp.lt.s32.totalorder %s42_s29, %s42_s29 }
  0x1d   :  { %p2932_p10 = scmp.ne.s32.totalorder %s42_s29, %s2931_s30  ;;  %p2937_p12 = scmp.lt.s32.totalorder %s2931_s30, %s2931_s30 }
  0x1f   :  { %p2938_p13 = por %p2937_p12, %p2936_p11 }
  0x21   :  { %p2939_p0 = pnand %p2938_p13, %p2932_p10 }
  0x23   :  { %2942 = shalt.err (!%p2939_p0)
}
  0x24   :  { %47 = dma.hbm_to_vmem [thread:$0]  %s3602_s2, 256, %s42_s29, [#allocation6], %s2970_s18, %s2970_s18, %s2971_s19  }
  0x25   :  { %2963 = dma.done.wait [#allocation3], 512  }
  0x26   :  { %2964 = vsyncadd [#allocation3], 4294966784 }
  0x27   :  { %2965 = dma.done.wait [#allocation6], 512  }
  0x28   :  { %2966 = vsyncadd [#allocation6], 4294966784  ;;  %v2751_v0 = vld [vmem:[#allocation5 + $0x8] sm:$0xff]   ;;  %v2752_v1 = vld [vmem:[#allocation5] sm:$0xff]   ;;  %vm82_vm0 = vcmask 261120   ;;  %v3605_v8 = vmov 0.0  }
  0x29   :  { %2436 = vmatprep.subr.bf16.mxu0 %v2751_v0  ;;  %v60_v2 = vld [vmem:[#allocation2] sm:$0xff]  ;;  %v61_v3 = vld [vmem:[#allocation2 + $0x8] sm:$0xff]  ;;  %v62_v4 = vld [vmem:[#allocation2 + $0x10] sm:$0xff]  ;;  %2444 = vmatprep.subr.bf16.mxu1 %v3605_v8  ;;  %vm2977_vm1 = vmmov 0   ;;  %s2978_s0 = smov 96   ;;  %s2979_s2 = smov 92  }
  0x2a   :  { %2437 = vmatpush3.bf16.msra.mxu0 %v2751_v0  ;;  %v64_v5 = vpack.c.bf16 %v61_v3, %v60_v2  ;;  %v63_v6 = vld [vmem:[#allocation2 + $0x18] sm:$0xff]  ;;  %2446 = vmatprep.mubr.msk.bf16.mxu1 %vm2977_vm1, %v3605_v8  ;;  %vm143_vm2 = vcmask 31744   ;;  %vm241_vm3 = vcmask 130048   ;;  %s2980_s7 = smov 124   ;;  %s2981_s8 = smov 60   ;;  %vm2192_vm4 = vcmask 64512  }
  0x2b   :  { %2438 = vmatprep.subr.bf16.mxu0 %v2752_v1  ;;  %v65_v7 = vpack.c.bf16 %v63_v6, %v62_v4  ;;  %s2982_s9 = smov 88   ;;  %s2983_s10 = smov 120   ;;  %vm2197_vm5 = vcmask 97280   ;;  %vm2206_vm6 = vcmask 162816   ;;  %vm2211_vm7 = vcmask 195584  }
  0x2c   :  { %2440 = vmatprep.mubr.msk.bf16.mxu0 %vm82_vm0, %v64_v5  ;;  %s2984_s11 = smov 56   ;;  %s2985_s12 = smov 84   ;;  %vm2216_vm8 = vcmask 228352  }
  0x2d   :  { %s2986_s13 = smov 116   ;;  %s2987_s14 = smov 52  }
  0x2e   :  { %2439 = vmatpush3.bf16.msra.mxu0 %v2752_v1  ;;  %s2988_s15 = smov 80   ;;  %s2989_s16 = smov 112  }
  0x2f   :  { %2450 = vmatprep.subr.bf16.mxu0 %v3605_v8  ;;  %s2990_s17 = smov 48   ;;  %s2992_s20 = smov 108  }
  0x30   :  { %s2993_s21 = smov 44   ;;  %s2994_s22 = smov 72  }
  0x31   :  { %2441 = vmatmul.mubr.msk.bf16.vlgmr.msra.gmra.mxu0 %vm82_vm0, %v65_v7  ;;  %s2995_s23 = smov 104   ;;  %s2996_s24 = smov 40  }
  0x32   :  { %2452 = vmatprep.mubr.msk.bf16.mxu0 %vm2977_vm1, %v3605_v8  ;;  %s2997_s27 = smov 68   ;;  %s2998_s28 = smov 100  }
  0x33   :  { %s2999_s1 = smov 36   ;;  %s3001_s29 = smov 16  }
  0x34   :  { %s3002_s30 = smov 20   ;;  %s3003_s5 = smov 24  }
  0x35   :  { %s3004_s6 = smov 28  }
  0xf1   :  { %v2442_v9 = vpop.f32.mrf.mxu0 }
  0xf3   :  { %v123_v10 = vpop.f32.mrf.mxu0 }
  0xf5   :  { %v2443_v11 = vpop.f32.mrf.mxu0 }
  0xf6   :  { %v3062_v14 = vpack.c.bf16 %v2443_v11, %v2442_v9 }
  0xf7   :  { %v126_v12 = vpop.f32.mrf.mxu0 }
  0xf8   :  { %v3057_v13 = vpack.c.bf16 %v126_v12, %v123_v10 }
  0xfa   :  { %280 = vrot.lane.b32.xlu1 %v3057_v13, %s2970_s18  ;;  %141 = vrot.lane.b32.xlu0 %v3057_v13, %s2978_s0 }
  0xfe   :  { %327 = vrot.lane.b32.xlu1 %v3062_v14, %s2970_s18  ;;  %192 = vrot.lane.b32.xlu0 %v3062_v14, %s2978_s0  ;;  %s2991_s18 = smov 76  }
 0x102   :  { %384 = vrot.lane.b32.xlu1 %v3057_v13, %s2979_s2 }
 0x16c   :  { %v142_v15 = vpop.permute.xlu0 %141  ;;  %v281_v19 = vpop.permute.xlu1 %280 }
 0x16d   :  { %v148_v16 = vsel %vm143_vm2, %v142_v15, 0 }
 0x16e   :  { %2445 = vmatpush3.bf16.xpose.msra.mxu1 %v148_v16 }
 0x16f   :  { %2456 = vmatprep.subr.bf16.mxu1 %v3605_v8 }
 0x170   :  { %v193_v17 = vpop.permute.xlu0 %192  ;;  %v328_v20 = vpop.permute.xlu1 %327 }
 0x171   :  { %v198_v18 = vsel %vm143_vm2, %v193_v17, 0 }
 0x172   :  { %2451 = vmatpush3.bf16.xpose.msra.mxu0 %v198_v18 }
 0x173   :  { %2462 = vmatprep.subr.bf16.mxu0 %v3605_v8 }
 0x174   :  { %v385_v33 = vpop.permute.xlu1 %384 }
 0x175   :  { %2447 = vmatmul.mubr.msk.bf16.vlgmr.msra.gmra.mxu1 %vm143_vm2, %v3057_v13  ;;  %v390_v54 = vsel %vm143_vm2, %v385_v33, 0 }
 0x176   :  { %2457 = vmatpush3.bf16.msra.mxu1 %v281_v19  ;;  %2458 = vmatprep.mubr.msk.bf16.mxu1 %vm2977_vm1, %v3605_v8 }
 0x177   :  { %2468 = vmatprep.subr.bf16.mxu1 %v3605_v8 }
 0x179   :  { %2453 = vmatmul.mubr.msk.bf16.vlgmr.msra.gmra.mxu0 %vm143_vm2, %v3062_v14 }
 0x17a   :  { %2463 = vmatpush3.bf16.msra.mxu0 %v328_v20  ;;  %2464 = vmatprep.mubr.msk.bf16.mxu0 %vm2977_vm1, %v3605_v8 }
 0x17b   :  { %2474 = vmatprep.subr.bf16.mxu0 %v3605_v8 }
 0x235   :  { %v184_v21 = vpop.f32.mrf.mxu1 }
 0x236   :  { %v242_v22 = vsel %vm241_vm3, %v184_v21, -inf }
 0x237   :  { %243 = vmax.xlane.f32.xlu1 %v242_v22  ;;  %v2448_v23 = vpop.f32.mrf.mxu1 }
 0x239   :  { %v187_v24 = vpop.f32.mrf.mxu1  ;;  %v234_v25 = vpop.f32.mrf.mxu0 }
 0x23a   :  { %v248_v26 = vsel %vm241_vm3, %v234_v25, -inf  ;;  %v245_v32 = vsel %vm241_vm3, %v187_v24, -inf }
 0x23b   :  { %v2449_v27 = vpop.f32.mrf.mxu1  ;;  %249 = vmax.xlane.f32.xlu0 %v248_v26  ;;  %v2454_v28 = vpop.f32.mrf.mxu0 }
 0x23d   :  { %v237_v29 = vpop.f32.mrf.mxu0 }
 0x23e   :  { %v251_v30 = vsel %vm241_vm3, %v237_v29, -inf }
 0x23f   :  { %252 = vmax.xlane.f32.xlu1 %v251_v30  ;;  %v2455_v31 = vpop.f32.mrf.mxu0 }
 0x243   :  { %246 = vmax.xlane.f32.xlu1 %v245_v32 }
 0x251   :  { %382 = vrot.lane.b32.xlu0 %v3057_v13, %s2980_s7 }
 0x254   :  { %435 = vrot.lane.b32.xlu1 %v3062_v14, %s2979_s2 }
 0x258   :  { %433 = vrot.lane.b32.xlu1 %v3062_v14, %s2980_s7  ;;  %s3005_s7 = smov [#allocation8]  }
 0x25c   :  { %522 = vrot.lane.b32.xlu1 %v3057_v13, %s2981_s8 }
 0x2c0   :  { %v244_v34 = vpop.xlane.xlu1 %243 }
 0x2c1   :  { %v254_v37 = vsub.f32 %v184_v21, %v244_v34 }
 0x2c3   :  { %v258_v42 = vmul.f32 1.442695, %v254_v37 }
 0x2c4   :  { %v250_v35 = vpop.xlane.xlu0 %249 }
 0x2c5   :  { %v256_v36 = vsub.f32 %v234_v25, %v250_v35 }
 0x2c7   :  { %v262_v38 = vmul.f32 1.442695, %v256_v36 }
 0x2c8   :  { %v253_v39 = vpop.xlane.xlu1 %252  ;;  %v383_v56 = vpop.permute.xlu0 %382 }
 0x2c9   :  { %v257_v40 = vsub.f32 %v237_v29, %v253_v39  ;;  %2755 = vpow2.f32 %v262_v38 }
 0x2cb   :  { %v264_v41 = vmul.f32 1.442695, %v257_v40 }
 0x2cc   :  { %v247_v43 = vpop.xlane.xlu1 %246 }
 0x2cd   :  { %2757 = vpow2.f32 %v264_v41  ;;  %v255_v44 = vsub.f32 %v187_v24, %v247_v43 }
 0x2ce   :  { %2759 = vpow2.f32 %v258_v42 }
 0x2cf   :  { %v260_v45 = vmul.f32 1.442695, %v255_v44 }
 0x2d0   :  { %v436_v48 = vpop.permute.xlu1 %435 }
 0x2d1   :  { %2761 = vpow2.f32 %v260_v45  ;;  %v441_v51 = vsel %vm143_vm2, %v436_v48, 0 }
 0x2d4   :  { %v434_v55 = vpop.permute.xlu1 %433 }
 0x2d6   :  { %v3093_v46 = vpop.eup %2755 }
 0x2d8   :  { %v523_v57 = vpop.permute.xlu1 %522 }
 0x2da   :  { %v3095_v47 = vpop.eup %2757 }
 0x2db   :  { %v279_v49 = vpack.c.bf16 %v3095_v47, %v3093_v46  ;;  %v3099_v50 = vpop.eup %2759 }
 0x2dd   :  { %2465 = vmatmul.mubr.msk.bf16.vlgmr.msra.gmra.mxu0 %vm241_vm3, %v279_v49 }
 0x2de   :  { %v3103_v52 = vpop.eup %2761  ;;  %2475 = vmatpush3.bf16.xpose.msra.mxu0 %v441_v51  ;;  %2476 = vmatprep.mubr.msk.bf16.mxu0 %vm2977_vm1, %v3605_v8 }
 0x2df   :  { %v278_v53 = vpack.c.bf16 %v3103_v52, %v3099_v50  ;;  %2486 = vmatprep.subr.bf16.mxu0 %v3605_v8 }
 0x2e1   :  { %2459 = vmatmul.mubr.msk.bf16.vlgmr.msra.gmra.mxu1 %vm241_vm3, %v278_v53 }
 0x2e2   :  { %2469 = vmatpush3.bf16.xpose.msra.mxu1 %v390_v54  ;;  %2470 = vmatprep.mubr.msk.bf16.mxu1 %vm2977_vm1, %v3605_v8 }
 0x2e3   :  { %2480 = vmatprep.subr.bf16.mxu1 %v3605_v8 }
 0x2e5   :  { %2477 = vmatmul.mubr.msk.bf16.vlgmr.msra.gmra.mxu0 %vm143_vm2, %v434_v55 }
 0x2e6   :  { %2488 = vmatprep.mubr.msk.bf16.mxu0 %vm2977_vm1, %v3605_v8 }
 0x2e9   :  { %2471 = vmatmul.mubr.msk.bf16.vlgmr.msra.gmra.mxu1 %vm143_vm2, %v383_v56 }
 0x2ea   :  { %2481 = vmatpush3.bf16.msra.mxu1 %v523_v57  ;;  %2482 = vmatprep.mubr.msk.bf16.mxu1 %vm2977_vm1, %v3605_v8 }
 0x2eb   :  { %2492 = vmatprep.subr.bf16.mxu1 %v3605_v8 }
 0x39d   :  { %v3122_v58 = vpop.f32.mrf.mxu0 }
 0x39e   :  { %3607 = vst [vmem:[#allocation12_spill] sm:$0xff] %v3122_v58 }
 0x39f   :  { %v2466_v59 = vpop.f32.mrf.mxu0 }
 0x3a1   :  { %v3124_v60 = vpop.f32.mrf.mxu1  ;;  %v3126_v61 = vpop.f32.mrf.mxu0 }
 0x3a2   :  { %3608 = vst [vmem:[#allocation13_spill] sm:$0xff] %v3124_v60  ;;  %3609 = vst [vmem:[#allocation14_spill] sm:$0xff] %v3126_v61 }
 0x3a3   :  { %v2460_v62 = vpop.f32.mrf.mxu1  ;;  %v2467_v63 = vpop.f32.mrf.mxu0 }
 0x3a5   :  { %v3128_v0 = vpop.f32.mrf.mxu1  ;;  %v477_v1 = vpop.f32.mrf.mxu0 }
 0x3a6   :  { %3610 = vst [vmem:[#allocation15_spill] sm:$0xff] %v3128_v0  ;;  %v490_v2 = vsel %vm241_vm3, %v477_v1, -inf }
 0x3a7   :  { %v2461_v3 = vpop.f32.mrf.mxu1  ;;  %491 = vmax.xlane.f32.xlu1 %v490_v2  ;;  %v2478_v4 = vpop.f32.mrf.mxu0 }
 0x3a9   :  { %v426_v5 = vpop.f32.mrf.mxu1  ;;  %v480_v6 = vpop.f32.mrf.mxu0 }
 0x3aa   :  { %v484_v7 = vsel %vm241_vm3, %v426_v5, -inf  ;;  %v493_v15 = vsel %vm241_vm3, %v480_v6, -inf }
 0x3ab   :  { %v2472_v9 = vpop.f32.mrf.mxu1  ;;  %485 = vmax.xlane.f32.xlu1 %v484_v7  ;;  %v2479_v10 = vpop.f32.mrf.mxu0 }
 0x3ad   :  { %v429_v11 = vpop.f32.mrf.mxu1 }
 0x3ae   :  { %v487_v12 = vsel %vm241_vm3, %v429_v11, -inf }
 0x3af   :  { %488 = vmax.xlane.f32.xlu0 %v487_v12  ;;  %v2473_v16 = vpop.f32.mrf.mxu1  ;;  %494 = vmax.xlane.f32.xlu1 %v493_v15 }
 0x3c0   :  { %626 = vrot.lane.b32.xlu1 %v3057_v13, %s2982_s9 }
 0x3c4   :  { %677 = vrot.lane.b32.xlu1 %v3062_v14, %s2982_s9 }
 0x3c5   :  { %569 = vrot.lane.b32.xlu0 %v3062_v14, %s2981_s8  ;;  %s2310_s8 = sshll.u32 %s3005_s7, 4  ;;  %s2311_s8 = int_to_ptr.vmem [resolvable:$true] %s2310_s8 }
 0x3c6   :  { %p2948_p2 = scmp.lt.s32.totalorder %s2311_s8, %s2311_s8 }
 0x3c8   :  { %675 = vrot.lane.b32.xlu1 %v3062_v14, %s2983_s10 }
 0x3c9   :  { %624 = vrot.lane.b32.xlu0 %v3057_v13, %s2983_s10 }
 0x3cc   :  { %764 = vrot.lane.b32.xlu1 %v3057_v13, %s2984_s11 }
 0x3d0   :  { %868 = vrot.lane.b32.xlu1 %v3057_v13, %s2985_s12 }
 0x430   :  { %v492_v17 = vpop.xlane.xlu1 %491 }
 0x431   :  { %v498_v18 = vsub.f32 %v477_v1, %v492_v17 }
 0x433   :  { %v504_v21 = vmul.f32 1.442695, %v498_v18 }
 0x434   :  { %v486_v19 = vpop.xlane.xlu1 %485 }
 0x435   :  { %v496_v20 = vsub.f32 %v426_v5, %v486_v19  ;;  %2763 = vpow2.f32 %v504_v21 }
 0x437   :  { %v500_v22 = vmul.f32 1.442695, %v496_v20 }
 0x438   :  { %v489_v23 = vpop.xlane.xlu0 %488  ;;  %v495_v24 = vpop.xlane.xlu1 %494 }
 0x439   :  { %v497_v25 = vsub.f32 %v429_v11, %v489_v23  ;;  %v499_v26 = vsub.f32 %v480_v6, %v495_v24  ;;  %2765 = vpow2.f32 %v500_v22 }
 0x43b   :  { %v502_v27 = vmul.f32 1.442695, %v497_v25  ;;  %v506_v28 = vmul.f32 1.442695, %v499_v26 }
 0x43c   :  { %v570_v29 = vpop.permute.xlu0 %569  ;;  %v627_v30 = vpop.permute.xlu1 %626 }
 0x43d   :  { %2767 = vpow2.f32 %v502_v27  ;;  %2487 = vmatpush3.bf16.msra.mxu0 %v570_v29  ;;  %v632_v38 = vsel %vm143_vm2, %v627_v30, 0 }
 0x43e   :  { %2769 = vpow2.f32 %v506_v28  ;;  %2498 = vmatprep.subr.bf16.mxu0 %v3605_v8 }
 0x440   :  { %v678_v33 = vpop.permute.xlu1 %677  ;;  %v625_v41 = vpop.permute.xlu0 %624 }
 0x441   :  { %v683_v39 = vsel %vm143_vm2, %v678_v33, 0 }
 0x442   :  { %v3145_v31 = vpop.eup %2763 }
 0x444   :  { %v676_v40 = vpop.permute.xlu1 %675 }
 0x446   :  { %v3147_v32 = vpop.eup %2765 }
 0x448   :  { %v765_v42 = vpop.permute.xlu1 %764 }
 0x44a   :  { %v3149_v34 = vpop.eup %2767 }
 0x44b   :  { %v3151_v35 = vpop.eup %2769  ;;  %v520_v36 = vpack.c.bf16 %v3149_v34, %v3147_v32 }
 0x44c   :  { %v521_v37 = vpack.c.bf16 %v3151_v35, %v3145_v31  ;;  %v869_v7 = vpop.permute.xlu1 %868 }
 0x44d   :  { %2483 = vmatmul.mubr.msk.bf16.vlgmr.msra.gmra.mxu1 %vm241_vm3, %v520_v36  ;;  %v874_v29 = vsel %vm143_vm2, %v869_v7, 0 }
 0x44e   :  { %2489 = vmatmul.mubr.msk.bf16.vlgmr.msra.gmra.mxu0 %vm241_vm3, %v521_v37  ;;  %2493 = vmatpush3.bf16.xpose.msra.mxu1 %v632_v38 }
 0x44f   :  { %2499 = vmatpush3.bf16.xpose.msra.mxu0 %v683_v39  ;;  %2494 = vmatprep.mubr.msk.bf16.mxu1 %vm2977_vm1, %v3605_v8 }
 0x450   :  { %2500 = vmatprep.mubr.msk.bf16.mxu0 %vm2977_vm1, %v3605_v8  ;;  %2504 = vmatprep.subr.bf16.mxu1 %v3605_v8 }
 0x451   :  { %2510 = vmatprep.subr.bf16.mxu0 %v3605_v8 }
 0x455   :  { %2495 = vmatmul.mubr.msk.bf16.vlgmr.msra.gmra.mxu1 %vm143_vm2, %v625_v41 }
 0x456   :  { %2501 = vmatmul.mubr.msk.bf16.vlgmr.msra.gmra.mxu0 %vm143_vm2, %v676_v40  ;;  %2505 = vmatpush3.bf16.msra.mxu1 %v765_v42 }
 0x457   :  { %2506 = vmatprep.mubr.msk.bf16.mxu1 %vm2977_vm1, %v3605_v8  ;;  %2516 = vmatprep.subr.bf16.mxu1 %v3605_v8 }
 0x458   :  { %2512 = vmatprep.mubr.msk.bf16.mxu0 %vm2977_vm1, %v3605_v8 }
 0x50d   :  { %v3174_v43 = vpop.f32.mrf.mxu1 }
 0x50e   :  { %v3176_v44 = vpop.f32.mrf.mxu0 }
 0x50f   :  { %v2484_v45 = vpop.f32.mrf.mxu1 }
 0x510   :  { %v2490_v48 = vpop.f32.mrf.mxu0 }
 0x511   :  { %v3178_v49 = vpop.f32.mrf.mxu1 }
 0x512   :  { %v3180_v51 = vpop.f32.mrf.mxu0 }
 0x513   :  { %v2485_v53 = vpop.f32.mrf.mxu1 }
 0x514   :  { %v2491_v54 = vpop.f32.mrf.mxu0 }
 0x515   :  { %v668_v55 = vpop.f32.mrf.mxu1 }
 0x516   :  { %v719_v56 = vpop.f32.mrf.mxu0  ;;  %v726_v4 = vsel %vm241_vm3, %v668_v55, -inf }
 0x517   :  { %v2496_v57 = vpop.f32.mrf.mxu1  ;;  %v732_v59 = vsel %vm241_vm3, %v719_v56, -inf }
 0x518   :  { %733 = vmax.xlane.f32.xlu0 %v732_v59  ;;  %v2502_v62 = vpop.f32.mrf.mxu0 }
 0x519   :  { %v671_v63 = vpop.f32.mrf.mxu1 }
 0x51a   :  { %v722_v1 = vpop.f32.mrf.mxu0  ;;  %v729_v2 = vsel %vm241_vm3, %v671_v63, -inf }
 0x51b   :  { %730 = vmax.xlane.f32.xlu1 %v729_v2  ;;  %v2497_v3 = vpop.f32.mrf.mxu1  ;;  %v735_v6 = vsel %vm241_vm3, %v722_v1, -inf }
 0x51c   :  { %727 = vmax.xlane.f32.xlu0 %v726_v4  ;;  %v2503_v5 = vpop.f32.mrf.mxu0 }
 0x520   :  { %736 = vmax.xlane.f32.xlu0 %v735_v6 }
 0x52c   :  { %919 = vrot.lane.b32.xlu1 %v3062_v14, %s2985_s12 }
 0x530   :  { %917 = vrot.lane.b32.xlu1 %v3062_v14, %s2986_s13 }
 0x534   :  { %1006 = vrot.lane.b32.xlu1 %v3057_v13, %s2987_s14 }
 0x536   :  { %811 = vrot.lane.b32.xlu0 %v3062_v14, %s2984_s11 }
 0x538   :  { %1110 = vrot.lane.b32.xlu1 %v3057_v13, %s2988_s15 }
 0x53a   :  { %866 = vrot.lane.b32.xlu0 %v3057_v13, %s2986_s13 }
 0x5a1   :  { %v734_v9 = vpop.xlane.xlu0 %733 }
 0x5a2   :  { %v740_v11 = vsub.f32 %v719_v56, %v734_v9 }
 0x5a4   :  { %v731_v10 = vpop.xlane.xlu1 %730  ;;  %v746_v19 = vmul.f32 1.442695, %v740_v11 }
 0x5a5   :  { %v739_v12 = vsub.f32 %v671_v63, %v731_v10  ;;  %v728_v15 = vpop.xlane.xlu0 %727 }
 0x5a6   :  { %v738_v16 = vsub.f32 %v668_v55, %v728_v15 }
 0x5a7   :  { %v744_v17 = vmul.f32 1.442695, %v739_v12 }
 0x5a8   :  { %v742_v18 = vmul.f32 1.442695, %v738_v16  ;;  %v920_v25 = vpop.permute.xlu1 %919 }
 0x5a9   :  { %2771 = vpow2.f32 %v744_v17  ;;  %v737_v20 = vpop.xlane.xlu0 %736  ;;  %v925_v37 = vsel %vm143_vm2, %v920_v25, 0 }
 0x5aa   :  { %2773 = vpow2.f32 %v742_v18  ;;  %v741_v21 = vsub.f32 %v722_v1, %v737_v20 }
 0x5ab   :  { %2775 = vpow2.f32 %v746_v19 }
 0x5ac   :  { %v748_v22 = vmul.f32 1.442695, %v741_v21  ;;  %v918_v33 = vpop.permute.xlu1 %917 }
 0x5ad   :  { %v812_v23 = vpop.permute.xlu0 %811 }
 0x5ae   :  { %2777 = vpow2.f32 %v748_v22  ;;  %2511 = vmatpush3.bf16.msra.mxu0 %v812_v23 }
 0x5af   :  { %2522 = vmatprep.subr.bf16.mxu0 %v3605_v8 }
 0x5b0   :  { %v1007_v39 = vpop.permute.xlu1 %1006 }
 0x5b1   :  { %v867_v38 = vpop.permute.xlu0 %866 }
 0x5b4   :  { %v1111_v9 = vpop.permute.xlu1 %1110 }
 0x5b6   :  { %v3197_v24 = vpop.eup %2771 }
 0x5b7   :  { %v3199_v26 = vpop.eup %2773 }
 0x5b8   :  { %v762_v27 = vpack.c.bf16 %v3197_v24, %v3199_v26  ;;  %v3203_v28 = vpop.eup %2775 }
 0x5ba   :  { %2507 = vmatmul.mubr.msk.bf16.vlgmr.msra.gmra.mxu1 %vm241_vm3, %v762_v27 }
 0x5bb   :  { %v3207_v30 = vpop.eup %2777  ;;  %2517 = vmatpush3.bf16.xpose.msra.mxu1 %v874_v29  ;;  %2518 = vmatprep.mubr.msk.bf16.mxu1 %vm2977_vm1, %v3605_v8 }
 0x5bc   :  { %v763_v36 = vpack.c.bf16 %v3207_v30, %v3203_v28  ;;  %2528 = vmatprep.subr.bf16.mxu1 %v3605_v8 }
 0x5be   :  { %2513 = vmatmul.mubr.msk.bf16.vlgmr.msra.gmra.mxu0 %vm241_vm3, %v763_v36 }
 0x5bf   :  { %2523 = vmatpush3.bf16.xpose.msra.mxu0 %v925_v37  ;;  %2524 = vmatprep.mubr.msk.bf16.mxu0 %vm2977_vm1, %v3605_v8 }
 0x5c0   :  { %2534 = vmatprep.subr.bf16.mxu0 %v3605_v8 }
 0x5c2   :  { %2519 = vmatmul.mubr.msk.bf16.vlgmr.msra.gmra.mxu1 %vm143_vm2, %v867_v38  ;;  %v1116_v38 = vsel %vm143_vm2, %v1111_v9, 0 }
 0x5c3   :  { %2529 = vmatpush3.bf16.msra.mxu1 %v1007_v39  ;;  %2530 = vmatprep.mubr.msk.bf16.mxu1 %vm2977_vm1, %v3605_v8 }
 0x5c4   :  { %2540 = vmatprep.subr.bf16.mxu1 %v3605_v8 }
 0x5c6   :  { %2525 = vmatmul.mubr.msk.bf16.vlgmr.msra.gmra.mxu0 %vm143_vm2, %v918_v33 }
 0x5c7   :  { %2536 = vmatprep.mubr.msk.bf16.mxu0 %vm2977_vm1, %v3605_v8 }
 0x67a   :  { %v3226_v40 = vpop.f32.mrf.mxu1 }
 0x67c   :  { %v2508_v41 = vpop.f32.mrf.mxu1 }
 0x67e   :  { %v3228_v42 = vpop.f32.mrf.mxu1  ;;  %v3230_v45 = vpop.f32.mrf.mxu0 }
 0x680   :  { %v2509_v48 = vpop.f32.mrf.mxu1  ;;  %v2514_v53 = vpop.f32.mrf.mxu0 }
 0x682   :  { %v3232_v54 = vpop.f32.mrf.mxu0  ;;  %v910_v55 = vpop.f32.mrf.mxu1 }
 0x683   :  { %v968_v5 = vsel %vm241_vm3, %v910_v55, -inf }
 0x684   :  { %v2515_v56 = vpop.f32.mrf.mxu0  ;;  %v2520_v57 = vpop.f32.mrf.mxu1 }
 0x686   :  { %v913_v59 = vpop.f32.mrf.mxu1  ;;  %v961_v62 = vpop.f32.mrf.mxu0 }
 0x687   :  { %v971_v63 = vsel %vm241_vm3, %v913_v59, -inf  ;;  %v974_v1 = vsel %vm241_vm3, %v961_v62, -inf }
 0x688   :  { %972 = vmax.xlane.f32.xlu1 %v971_v63  ;;  %v2521_v2 = vpop.f32.mrf.mxu1  ;;  %975 = vmax.xlane.f32.xlu0 %v974_v1  ;;  %v2526_v3 = vpop.f32.mrf.mxu0 }
 0x68a   :  { %v964_v4 = vpop.f32.mrf.mxu0 }
 0x68b   :  { %v977_v7 = vsel %vm241_vm3, %v964_v4, -inf }
 0x68c   :  { %969 = vmax.xlane.f32.xlu0 %v968_v5  ;;  %v2527_v6 = vpop.f32.mrf.mxu0 }
 0x690   :  { %978 = vmax.xlane.f32.xlu0 %v977_v7 }
 0x699   :  { %1161 = vrot.lane.b32.xlu1 %v3062_v14, %s2988_s15 }
 0x69d   :  { %1159 = vrot.lane.b32.xlu1 %v3062_v14, %s2989_s16 }
 0x6a1   :  { %1248 = vrot.lane.b32.xlu1 %v3057_v13, %s2990_s17 }
 0x6a5   :  { %1352 = vrot.lane.b32.xlu1 %v3057_v13, %s2991_s18 }
 0x6a6   :  { %1053 = vrot.lane.b32.xlu0 %v3062_v14, %s2987_s14 }
 0x6aa   :  { %1108 = vrot.lane.b32.xlu0 %v3057_v13, %s2989_s16 }
 0x711   :  { %v973_v10 = vpop.xlane.xlu1 %972  ;;  %v976_v11 = vpop.xlane.xlu0 %975 }
 0x712   :  { %v981_v12 = vsub.f32 %v913_v59, %v973_v10  ;;  %v982_v16 = vsub.f32 %v961_v62, %v976_v11 }
 0x714   :  { %v986_v15 = vmul.f32 1.442695, %v981_v12  ;;  %v988_v20 = vmul.f32 1.442695, %v982_v16 }
 0x715   :  { %v970_v17 = vpop.xlane.xlu0 %969  ;;  %v1162_v29 = vpop.permute.xlu1 %1161 }
 0x716   :  { %v980_v18 = vsub.f32 %v910_v55, %v970_v17  ;;  %2779 = vpow2.f32 %v986_v15  ;;  %v1167_v53 = vsel %vm143_vm2, %v1162_v29, 0 }
 0x718   :  { %v984_v19 = vmul.f32 1.442695, %v980_v18 }
 0x719   :  { %v979_v21 = vpop.xlane.xlu0 %978  ;;  %v1160_v41 = vpop.permute.xlu1 %1159 }
 0x71a   :  { %2781 = vpow2.f32 %v984_v19  ;;  %v983_v22 = vsub.f32 %v964_v4, %v979_v21 }
 0x71b   :  { %2783 = vpow2.f32 %v988_v20 }
 0x71c   :  { %v990_v23 = vmul.f32 1.442695, %v983_v22 }
 0x71d   :  { %v1054_v25 = vpop.permute.xlu0 %1053  ;;  %v1249_v56 = vpop.permute.xlu1 %1248 }
 0x71e   :  { %2785 = vpow2.f32 %v990_v23  ;;  %2535 = vmatpush3.bf16.msra.mxu0 %v1054_v25 }
 0x71f   :  { %2546 = vmatprep.subr.bf16.mxu0 %v3605_v8 }
 0x721   :  { %v1109_v55 = vpop.permute.xlu0 %1108  ;;  %v1353_v20 = vpop.permute.xlu1 %1352 }
 0x723   :  { %v3249_v27 = vpop.eup %2779 }
 0x727   :  { %v3251_v33 = vpop.eup %2781 }
 0x728   :  { %v1004_v36 = vpack.c.bf16 %v3249_v27, %v3251_v33  ;;  %v3255_v37 = vpop.eup %2783 }
 0x72a   :  { %2531 = vmatmul.mubr.msk.bf16.vlgmr.msra.gmra.mxu1 %vm241_vm3, %v1004_v36 }
 0x72b   :  { %v3259_v39 = vpop.eup %2785  ;;  %2541 = vmatpush3.bf16.xpose.msra.mxu1 %v1116_v38  ;;  %2542 = vmatprep.mubr.msk.bf16.mxu1 %vm2977_vm1, %v3605_v8 }
 0x72c   :  { %v1005_v48 = vpack.c.bf16 %v3259_v39, %v3255_v37  ;;  %2552 = vmatprep.subr.bf16.mxu1 %v3605_v8 }
 0x72e   :  { %2537 = vmatmul.mubr.msk.bf16.vlgmr.msra.gmra.mxu0 %vm241_vm3, %v1005_v48 }
 0x72f   :  { %2547 = vmatpush3.bf16.xpose.msra.mxu0 %v1167_v53  ;;  %2548 = vmatprep.mubr.msk.bf16.mxu0 %vm2977_vm1, %v3605_v8 }
 0x730   :  { %2558 = vmatprep.subr.bf16.mxu0 %v3605_v8 }
 0x732   :  { %2543 = vmatmul.mubr.msk.bf16.vlgmr.msra.gmra.mxu1 %vm143_vm2, %v1109_v55 }
 0x733   :  { %2553 = vmatpush3.bf16.msra.mxu1 %v1249_v56  ;;  %2554 = vmatprep.mubr.msk.bf16.mxu1 %vm2977_vm1, %v3605_v8 }
 0x734   :  { %2564 = vmatprep.subr.bf16.mxu1 %v3605_v8 }
 0x736   :  { %2549 = vmatmul.mubr.msk.bf16.vlgmr.msra.gmra.mxu0 %vm143_vm2, %v1160_v41 }
 0x737   :  { %2560 = vmatprep.mubr.msk.bf16.mxu0 %vm2977_vm1, %v3605_v8 }
 0x7ea   :  { %v3278_v57 = vpop.f32.mrf.mxu1 }
 0x7ec   :  { %v2532_v59 = vpop.f32.mrf.mxu1 }
 0x7ee   :  { %v3280_v62 = vpop.f32.mrf.mxu1  ;;  %v3282_v63 = vpop.f32.mrf.mxu0 }
 0x7f0   :  { %v2533_v1 = vpop.f32.mrf.mxu1  ;;  %v2538_v2 = vpop.f32.mrf.mxu0 }
 0x7f2   :  { %v3284_v3 = vpop.f32.mrf.mxu0  ;;  %v1152_v4 = vpop.f32.mrf.mxu1 }
 0x7f3   :  { %v1210_v17 = vsel %vm241_vm3, %v1152_v4, -inf }
 0x7f4   :  { %v2539_v5 = vpop.f32.mrf.mxu0  ;;  %v2544_v6 = vpop.f32.mrf.mxu1 }
 0x7f6   :  { %v1155_v7 = vpop.f32.mrf.mxu1  ;;  %v1203_v9 = vpop.f32.mrf.mxu0 }
 0x7f7   :  { %v1213_v10 = vsel %vm241_vm3, %v1155_v7, -inf  ;;  %v1216_v11 = vsel %vm241_vm3, %v1203_v9, -inf }
 0x7f8   :  { %1214 = vmax.xlane.f32.xlu1 %v1213_v10  ;;  %v2545_v12 = vpop.f32.mrf.mxu1  ;;  %1217 = vmax.xlane.f32.xlu0 %v1216_v11  ;;  %v2550_v15 = vpop.f32.mrf.mxu0 }
 0x7fa   :  { %v1206_v16 = vpop.f32.mrf.mxu0 }
 0x7fb   :  { %v1219_v19 = vsel %vm241_vm3, %v1206_v16, -inf }
 0x7fc   :  { %1211 = vmax.xlane.f32.xlu0 %v1210_v17  ;;  %v2551_v18 = vpop.f32.mrf.mxu0 }
 0x800   :  { %1220 = vmax.xlane.f32.xlu0 %v1219_v19 }
 0x809   :  { %1403 = vrot.lane.b32.xlu1 %v3062_v14, %s2991_s18 }
 0x80d   :  { %1401 = vrot.lane.b32.xlu1 %v3062_v14, %s2992_s20 }
 0x811   :  { %1490 = vrot.lane.b32.xlu1 %v3057_v13, %s2993_s21 }
 0x815   :  { %1594 = vrot.lane.b32.xlu1 %v3057_v13, %s2994_s22 }
 0x816   :  { %1295 = vrot.lane.b32.xlu0 %v3062_v14, %s2990_s17 }
 0x81a   :  { %1350 = vrot.lane.b32.xlu0 %v3057_v13, %s2992_s20 }
 0x881   :  { %v1215_v21 = vpop.xlane.xlu1 %1214  ;;  %v1218_v22 = vpop.xlane.xlu0 %1217 }
 0x882   :  { %v1223_v23 = vsub.f32 %v1155_v7, %v1215_v21  ;;  %v1224_v29 = vsub.f32 %v1203_v9, %v1218_v22  ;;  %v1358_v7 = vsel %vm143_vm2, %v1353_v20, 0 }
 0x884   :  { %v1228_v25 = vmul.f32 1.442695, %v1223_v23  ;;  %v1230_v48 = vmul.f32 1.442695, %v1224_v29 }
 0x885   :  { %v1212_v36 = vpop.xlane.xlu0 %1211  ;;  %v1404_v2 = vpop.permute.xlu1 %1403 }
 0x886   :  { %v1222_v38 = vsub.f32 %v1152_v4, %v1212_v36  ;;  %2787 = vpow2.f32 %v1228_v25  ;;  %v1409_v12 = vsel %vm143_vm2, %v1404_v2, 0 }
 0x888   :  { %v1226_v41 = vmul.f32 1.442695, %v1222_v38 }
 0x889   :  { %v1221_v53 = vpop.xlane.xlu0 %1220  ;;  %v1402_v10 = vpop.permute.xlu1 %1401 }
 0x88a   :  { %2789 = vpow2.f32 %v1226_v41  ;;  %v1225_v55 = vsub.f32 %v1206_v16, %v1221_v53 }
 0x88b   :  { %2791 = vpow2.f32 %v1230_v48 }
 0x88c   :  { %v1232_v56 = vmul.f32 1.442695, %v1225_v55 }
 0x88d   :  { %v1296_v59 = vpop.permute.xlu0 %1295  ;;  %v1491_v16 = vpop.permute.xlu1 %1490 }
 0x88e   :  { %2793 = vpow2.f32 %v1232_v56  ;;  %2559 = vmatpush3.bf16.msra.mxu0 %v1296_v59 }
 0x88f   :  { %2570 = vmatprep.subr.bf16.mxu0 %v3605_v8 }
 0x891   :  { %v1351_v15 = vpop.permute.xlu0 %1350 }
 0x893   :  { %v3301_v1 = vpop.eup %2787 }
 0x897   :  { %v3303_v5 = vpop.eup %2789 }
 0x898   :  { %v1246_v4 = vpack.c.bf16 %v3301_v1, %v3303_v5  ;;  %v3307_v6 = vpop.eup %2791 }
 0x89a   :  { %2555 = vmatmul.mubr.msk.bf16.vlgmr.msra.gmra.mxu1 %vm241_vm3, %v1246_v4 }
 0x89b   :  { %v3311_v9 = vpop.eup %2793  ;;  %2565 = vmatpush3.bf16.xpose.msra.mxu1 %v1358_v7  ;;  %2566 = vmatprep.mubr.msk.bf16.mxu1 %vm2977_vm1, %v3605_v8 }
 0x89c   :  { %v1247_v11 = vpack.c.bf16 %v3311_v9, %v3307_v6  ;;  %2576 = vmatprep.subr.bf16.mxu1 %v3605_v8 }
 0x89e   :  { %2561 = vmatmul.mubr.msk.bf16.vlgmr.msra.gmra.mxu0 %vm241_vm3, %v1247_v11 }
 0x89f   :  { %2571 = vmatpush3.bf16.xpose.msra.mxu0 %v1409_v12  ;;  %2572 = vmatprep.mubr.msk.bf16.mxu0 %vm2977_vm1, %v3605_v8 }
 0x8a0   :  { %2582 = vmatprep.subr.bf16.mxu0 %v3605_v8 }
 0x8a2   :  { %2567 = vmatmul.mubr.msk.bf16.vlgmr.msra.gmra.mxu1 %vm143_vm2, %v1351_v15 }
 0x8a3   :  { %2577 = vmatpush3.bf16.msra.mxu1 %v1491_v16  ;;  %2578 = vmatprep.mubr.msk.bf16.mxu1 %vm2977_vm1, %v3605_v8 }
 0x8a4   :  { %2588 = vmatprep.subr.bf16.mxu1 %v3605_v8 }
 0x8a6   :  { %2573 = vmatmul.mubr.msk.bf16.vlgmr.msra.gmra.mxu0 %vm143_vm2, %v1402_v10  ;;  %v1595_v10 = vpop.permute.xlu1 %1594 }
 0x8a7   :  { %2584 = vmatprep.mubr.msk.bf16.mxu0 %vm2977_vm1, %v3605_v8 }
 0x95a   :  { %v3330_v17 = vpop.f32.mrf.mxu1 }
 0x95c   :  { %v2556_v18 = vpop.f32.mrf.mxu1 }
 0x95e   :  { %v3332_v19 = vpop.f32.mrf.mxu1  ;;  %v3334_v20 = vpop.f32.mrf.mxu0 }
 0x960   :  { %v2557_v21 = vpop.f32.mrf.mxu1  ;;  %v2562_v22 = vpop.f32.mrf.mxu0 }
 0x962   :  { %v3336_v23 = vpop.f32.mrf.mxu0  ;;  %v1394_v25 = vpop.f32.mrf.mxu1 }
 0x963   :  { %v1452_v2 = vsel %vm241_vm3, %v1394_v25, -inf }
 0x964   :  { %v2563_v29 = vpop.f32.mrf.mxu0  ;;  %v2568_v36 = vpop.f32.mrf.mxu1 }
 0x966   :  { %v1397_v38 = vpop.f32.mrf.mxu1  ;;  %v1445_v41 = vpop.f32.mrf.mxu0 }
 0x967   :  { %v1455_v48 = vsel %vm241_vm3, %v1397_v38, -inf  ;;  %v1458_v53 = vsel %vm241_vm3, %v1445_v41, -inf }
 0x968   :  { %1456 = vmax.xlane.f32.xlu1 %v1455_v48  ;;  %v2569_v55 = vpop.f32.mrf.mxu1  ;;  %1459 = vmax.xlane.f32.xlu0 %v1458_v53  ;;  %v2574_v56 = vpop.f32.mrf.mxu0 }
 0x96a   :  { %v1448_v59 = vpop.f32.mrf.mxu0 }
 0x96b   :  { %v1461_v7 = vsel %vm241_vm3, %v1448_v59, -inf }
 0x96c   :  { %1453 = vmax.xlane.f32.xlu0 %v1452_v2  ;;  %v2575_v4 = vpop.f32.mrf.mxu0 }
 0x970   :  { %1462 = vmax.xlane.f32.xlu0 %v1461_v7  ;;  %v1600_v7 = vsel %vm143_vm2, %v1595_v10, 0 }
 0x979   :  { %1645 = vrot.lane.b32.xlu1 %v3062_v14, %s2994_s22 }
 0x97d   :  { %1643 = vrot.lane.b32.xlu1 %v3062_v14, %s2995_s23 }
 0x981   :  { %1732 = vrot.lane.b32.xlu1 %v3057_v13, %s2996_s24 }
 0x985   :  { %1836 = vrot.lane.b32.xlu1 %v3057_v13, %s2997_s27 }
 0x986   :  { %1537 = vrot.lane.b32.xlu0 %v3062_v14, %s2993_s21 }
 0x98a   :  { %1592 = vrot.lane.b32.xlu0 %v3057_v13, %s2995_s23 }
 0x9f1   :  { %v1457_v11 = vpop.xlane.xlu1 %1456  ;;  %v1460_v12 = vpop.xlane.xlu0 %1459 }
 0x9f2   :  { %v1465_v15 = vsub.f32 %v1397_v38, %v1457_v11  ;;  %v1466_v18 = vsub.f32 %v1445_v41, %v1460_v12 }
 0x9f4   :  { %v1470_v16 = vmul.f32 1.442695, %v1465_v15  ;;  %v1472_v36 = vmul.f32 1.442695, %v1466_v18 }
 0x9f5   :  { %v1454_v21 = vpop.xlane.xlu0 %1453  ;;  %v1646_v38 = vpop.permute.xlu1 %1645 }
 0x9f6   :  { %v1464_v22 = vsub.f32 %v1394_v25, %v1454_v21  ;;  %2795 = vpow2.f32 %v1470_v16  ;;  %v1651_v15 = vsel %vm143_vm2, %v1646_v38, 0 }
 0x9f8   :  { %v1468_v29 = vmul.f32 1.442695, %v1464_v22 }
 0x9f9   :  { %v1463_v48 = vpop.xlane.xlu0 %1462  ;;  %v1644_v11 = vpop.permute.xlu1 %1643 }
 0x9fa   :  { %2797 = vpow2.f32 %v1468_v29  ;;  %v1467_v53 = vsub.f32 %v1448_v59, %v1463_v48 }
 0x9fb   :  { %2799 = vpow2.f32 %v1472_v36 }
 0x9fc   :  { %v1474_v55 = vmul.f32 1.442695, %v1467_v53 }
 0x9fd   :  { %v1538_v56 = vpop.permute.xlu0 %1537  ;;  %v1733_v16 = vpop.permute.xlu1 %1732 }
 0x9fe   :  { %2801 = vpow2.f32 %v1474_v55  ;;  %2583 = vmatpush3.bf16.msra.mxu0 %v1538_v56 }
 0x9ff   :  { %2594 = vmatprep.subr.bf16.mxu0 %v3605_v8 }
 0xa01   :  { %v1593_v10 = vpop.permute.xlu0 %1592 }
 0xa03   :  { %v3353_v2 = vpop.eup %2795 }
 0xa07   :  { %v3355_v4 = vpop.eup %2797 }
 0xa08   :  { %v1488_v25 = vpack.c.bf16 %v3353_v2, %v3355_v4  ;;  %v3359_v41 = vpop.eup %2799 }
 0xa0a   :  { %2579 = vmatmul.mubr.msk.bf16.vlgmr.msra.gmra.mxu1 %vm241_vm3, %v1488_v25 }
 0xa0b   :  { %v3363_v59 = vpop.eup %2801  ;;  %2589 = vmatpush3.bf16.xpose.msra.mxu1 %v1600_v7  ;;  %2590 = vmatprep.mubr.msk.bf16.mxu1 %vm2977_vm1, %v3605_v8 }
 0xa0c   :  { %v1489_v12 = vpack.c.bf16 %v3363_v59, %v3359_v41  ;;  %2600 = vmatprep.subr.bf16.mxu1 %v3605_v8 }
 0xa0e   :  { %2585 = vmatmul.mubr.msk.bf16.vlgmr.msra.gmra.mxu0 %vm241_vm3, %v1489_v12 }
 0xa0f   :  { %2595 = vmatpush3.bf16.xpose.msra.mxu0 %v1651_v15  ;;  %2596 = vmatprep.mubr.msk.bf16.mxu0 %vm2977_vm1, %v3605_v8 }
 0xa10   :  { %2606 = vmatprep.subr.bf16.mxu0 %v3605_v8 }
 0xa12   :  { %2591 = vmatmul.mubr.msk.bf16.vlgmr.msra.gmra.mxu1 %vm143_vm2, %v1593_v10 }
 0xa13   :  { %2601 = vmatpush3.bf16.msra.mxu1 %v1733_v16  ;;  %2602 = vmatprep.mubr.msk.bf16.mxu1 %vm2977_vm1, %v3605_v8 }
 0xa14   :  { %2612 = vmatprep.subr.bf16.mxu1 %v3605_v8 }
 0xa16   :  { %2597 = vmatmul.mubr.msk.bf16.vlgmr.msra.gmra.mxu0 %vm143_vm2, %v1644_v11 }
 0xa17   :  { %2608 = vmatprep.mubr.msk.bf16.mxu0 %vm2977_vm1, %v3605_v8 }
 0xaca   :  { %v3382_v18 = vpop.f32.mrf.mxu1 }
 0xacc   :  { %v2580_v21 = vpop.f32.mrf.mxu1 }
 0xace   :  { %v3384_v22 = vpop.f32.mrf.mxu1  ;;  %v3386_v29 = vpop.f32.mrf.mxu0 }
 0xacf   :  { %3611 = vst [vmem:[#allocation16_spill] sm:$0xff] %v3386_v29 }
 0xad0   :  { %v2581_v36 = vpop.f32.mrf.mxu1  ;;  %v2586_v48 = vpop.f32.mrf.mxu0 }
 0xad2   :  { %v3388_v53 = vpop.f32.mrf.mxu0  ;;  %v1636_v55 = vpop.f32.mrf.mxu1 }
 0xad3   :  { %3612 = vst [vmem:[#allocation17_spill] sm:$0xff] %v3388_v53  ;;  %v1694_v21 = vsel %vm241_vm3, %v1636_v55, -inf  ;;  %v3613_v53 = vmov 0.0  }
 0xad4   :  { %v2587_v56 = vpop.f32.mrf.mxu0  ;;  %v2592_v38 = vpop.f32.mrf.mxu1 }
 0xad5   :  { %v1837_v56 = vpop.permute.xlu1 %1836 }
 0xad6   :  { %v1639_v25 = vpop.f32.mrf.mxu1  ;;  %v1687_v7 = vpop.f32.mrf.mxu0 }
 0xad7   :  { %v1697_v11 = vsel %vm241_vm3, %v1639_v25, -inf  ;;  %v1700_v12 = vsel %vm241_vm3, %v1687_v7, -inf }
 0xad8   :  { %1698 = vmax.xlane.f32.xlu1 %v1697_v11  ;;  %v2593_v15 = vpop.f32.mrf.mxu1  ;;  %1701 = vmax.xlane.f32.xlu0 %v1700_v12  ;;  %v2598_v10 = vpop.f32.mrf.mxu0 }
 0xada   :  { %v1690_v16 = vpop.f32.mrf.mxu0 }
 0xadb   :  { %v1703_v48 = vsel %vm241_vm3, %v1690_v16, -inf }
 0xadc   :  { %1695 = vmax.xlane.f32.xlu0 %v1694_v21  ;;  %v2599_v36 = vpop.f32.mrf.mxu0 }
 0xae0   :  { %1704 = vmax.xlane.f32.xlu0 %v1703_v48 }
 0xae9   :  { %1887 = vrot.lane.b32.xlu1 %v3062_v14, %s2997_s27 }
 0xaed   :  { %1885 = vrot.lane.b32.xlu1 %v3062_v14, %s2998_s28 }
 0xaf6   :  { %1779 = vrot.lane.b32.xlu0 %v3062_v14, %s2996_s24 }
 0xafa   :  { %1834 = vrot.lane.b32.xlu0 %v3057_v13, %s2998_s28 }
 0xb61   :  { %v1699_v38 = vpop.xlane.xlu1 %1698  ;;  %v1702_v11 = vpop.xlane.xlu0 %1701 }
 0xb62   :  { %v1707_v12 = vsub.f32 %v1639_v25, %v1699_v38  ;;  %v1708_v10 = vsub.f32 %v1687_v7, %v1702_v11  ;;  %v1842_v38 = vsel %vm143_vm2, %v1837_v56, 0 }
 0xb64   :  { %v1712_v15 = vmul.f32 1.442695, %v1707_v12  ;;  %v1714_v8 = vmul.f32 1.442695, %v1708_v10 }
 0xb65   :  { %v1696_v21 = vpop.xlane.xlu0 %1695 }
 0xb66   :  { %v1706_v36 = vsub.f32 %v1636_v55, %v1696_v21  ;;  %2803 = vpow2.f32 %v1712_v15 }
 0xb68   :  { %v1710_v48 = vmul.f32 1.442695, %v1706_v36 }
 0xb69   :  { %v1705_v61 = vpop.xlane.xlu0 %1704 }
 0xb6a   :  { %2805 = vpow2.f32 %v1710_v48  ;;  %v1709_v58 = vsub.f32 %v1690_v16, %v1705_v61 }
 0xb6b   :  { %2807 = vpow2.f32 %v1714_v8  ;;  %v1888_v8 = vpop.permute.xlu1 %1887 }
 0xb6c   :  { %v1716_v0 = vmul.f32 1.442695, %v1709_v58  ;;  %v1893_v61 = vsel %vm143_vm2, %v1888_v8, 0 }
 0xb6d   :  { %v1780_v60 = vpop.permute.xlu0 %1779 }
 0xb6e   :  { %2809 = vpow2.f32 %v1716_v0  ;;  %2607 = vmatpush3.bf16.msra.mxu0 %v1780_v60 }
 0xb6f   :  { %2618 = vmatprep.subr.bf16.mxu0 %v3613_v53  ;;  %v1886_v16 = vpop.permute.xlu1 %1885 }
 0xb71   :  { %v1835_v0 = vpop.permute.xlu0 %1834 }
 0xb73   :  { %v3401_v29 = vpop.eup %2803 }
 0xb77   :  { %v3403_v25 = vpop.eup %2805 }
 0xb78   :  { %v1730_v55 = vpack.c.bf16 %v3401_v29, %v3403_v25  ;;  %v3407_v7 = vpop.eup %2807 }
 0xb7a   :  { %2603 = vmatmul.mubr.msk.bf16.vlgmr.msra.gmra.mxu1 %vm241_vm3, %v1730_v55 }
 0xb7b   :  { %v3411_v58 = vpop.eup %2809  ;;  %2613 = vmatpush3.bf16.xpose.msra.mxu1 %v1842_v38  ;;  %2614 = vmatprep.mubr.msk.bf16.mxu1 %vm2977_vm1, %v3613_v53 }
 0xb7c   :  { %v1731_v60 = vpack.c.bf16 %v3411_v58, %v3407_v7  ;;  %2624 = vmatprep.subr.bf16.mxu1 %v3613_v53 }
 0xb7e   :  { %2609 = vmatmul.mubr.msk.bf16.vlgmr.msra.gmra.mxu0 %vm241_vm3, %v1731_v60 }
 0xb7f   :  { %2619 = vmatpush3.bf16.xpose.msra.mxu0 %v1893_v61  ;;  %2620 = vmatprep.mubr.msk.bf16.mxu0 %vm2977_vm1, %v3613_v53 }
 0xb80   :  { %2630 = vmatprep.subr.bf16.mxu0 %v3613_v53 }
 0xb82   :  { %2615 = vmatmul.mubr.msk.bf16.vlgmr.msra.gmra.mxu1 %vm143_vm2, %v1835_v0 }
 0xb83   :  { %2626 = vmatprep.mubr.msk.bf16.mxu1 %vm2977_vm1, %v3613_v53 }
 0xb86   :  { %2621 = vmatmul.mubr.msk.bf16.vlgmr.msra.gmra.mxu0 %vm143_vm2, %v1886_v16 }
 0xb87   :  { %2632 = vmatprep.mubr.msk.bf16.mxu0 %vm2977_vm1, %v3613_v53 }
 0xc3a   :  { %v3429_v56 = vpop.f32.mrf.mxu1 }
 0xc3c   :  { %v2604_v11 = vpop.f32.mrf.mxu1 }
 0xc3e   :  { %v3431_v12 = vpop.f32.mrf.mxu1  ;;  %v3433_v15 = vpop.f32.mrf.mxu0 }
 0xc40   :  { %v2605_v10 = vpop.f32.mrf.mxu1  ;;  %v2610_v21 = vpop.f32.mrf.mxu0 }
 0xc42   :  { %v3435_v36 = vpop.f32.mrf.mxu0  ;;  %v3437_v48 = vpop.f32.mrf.mxu1 }
 0xc43   :  { %v1936_v10 = vsel %vm241_vm3, %v3437_v48, -inf }
 0xc44   :  { %v2611_v55 = vpop.f32.mrf.mxu0  ;;  %v2616_v38 = vpop.f32.mrf.mxu1 }
 0xc45   :  { %v508_v38 = vsel %vm241_vm3, %v3147_v32, 0.0  ;;  %v753_v32 = vsel %vm241_vm3, %v3197_v24, 0.0  ;;  %v1240_v24 = vsel %vm241_vm3, %v3307_v6, 0.0  ;;  %v1479_v6 = vsel %vm241_vm3, %v3353_v2, 0.0 }
 0xc46   :  { %v3439_v8 = vpop.f32.mrf.mxu1  ;;  %v3441_v60 = vpop.f32.mrf.mxu0 }
 0xc47   :  { %v1939_v53 = vsel %vm241_vm3, %v3439_v8, -inf  ;;  %v1942_v61 = vsel %vm241_vm3, %v3441_v60, -inf }
 0xc48   :  { %1940 = vmax.xlane.f32.xlu1 %v1939_v53  ;;  %v2617_v0 = vpop.f32.mrf.mxu1  ;;  %1943 = vmax.xlane.f32.xlu0 %v1942_v61  ;;  %v2622_v16 = vpop.f32.mrf.mxu0  ;;  %v514_v53 = vsel %vm241_vm3, %v3145_v31, 0.0  ;;  %v750_v61 = vsel %vm241_vm3, %v3199_v26, 0.0  ;;  %v992_v31 = vsel %vm241_vm3, %v3251_v33, 0.0  ;;  %v759_v26 = vsel %vm241_vm3, %v3207_v30, 0.0 }
 0xc49   :  { %v511_v0 = vsel %vm241_vm3, %v3149_v34, 0.0  ;;  %v998_v34 = vsel %vm241_vm3, %v3255_v37, 0.0  ;;  %v1001_v33 = vsel %vm241_vm3, %v3259_v39, 0.0  ;;  %v1476_v30 = vsel %vm241_vm3, %v3355_v4, 0.0 }
 0xc4a   :  { %v3447_v11 = vpop.f32.mrf.mxu0  ;;  %v1237_v37 = vsel %vm241_vm3, %v3301_v1, 0.0  ;;  %v1718_v39 = vsel %vm241_vm3, %v3403_v25, 0.0  ;;  %v1724_v1 = vsel %vm241_vm3, %v3407_v7, 0.0  ;;  %v1485_v4 = vsel %vm241_vm3, %v3363_v59, 0.0 }
 0xc4b   :  { %v1945_v55 = vsel %vm241_vm3, %v3447_v11, -inf }
 0xc4c   :  { %1937 = vmax.xlane.f32.xlu0 %v1936_v10  ;;  %v2623_v21 = vpop.f32.mrf.mxu0 }
 0xc50   :  { %1946 = vmax.xlane.f32.xlu0 %v1945_v55 }
 0xc59   :  { %1974 = vrot.lane.b32.xlu1 %v3057_v13, %s2999_s1  ;;  %v756_v13 = vsel %vm241_vm3, %v3203_v28, 0.0  ;;  %v995_v28 = vsel %vm241_vm3, %v3249_v27, 0.0  ;;  %v1482_v27 = vsel %vm241_vm3, %v3359_v41, 0.0  ;;  %v1727_v41 = vsel %vm241_vm3, %v3411_v58, 0.0 }
 0xc66   :  { %2021 = vrot.lane.b32.xlu0 %v3062_v14, %s2999_s1  ;;  %v517_v14 = vsel %vm241_vm3, %v3151_v35, 0.0  ;;  %v1234_v35 = vsel %vm241_vm3, %v3303_v5, 0.0  ;;  %v1243_v5 = vsel %vm241_vm3, %v3311_v9, 0.0  ;;  %v1721_v9 = vsel %vm241_vm3, %v3401_v29, 0.0 }
 0xc7d   :  { %509 = vadd.xlane.f32.xlu1 %v508_v38 }
 0xc81   :  { %515 = vadd.xlane.f32.xlu1 %v514_v53 }
 0xc85   :  { %751 = vadd.xlane.f32.xlu1 %v750_v61  ;;  %512 = vadd.xlane.f32.xlu0 %v511_v0 }
 0xc89   :  { %757 = vadd.xlane.f32.xlu1 %v756_v13  ;;  %518 = vadd.xlane.f32.xlu0 %v517_v14 }
 0xc8d   :  { %993 = vadd.xlane.f32.xlu1 %v992_v31  ;;  %754 = vadd.xlane.f32.xlu0 %v753_v32 }
 0xc91   :  { %999 = vadd.xlane.f32.xlu1 %v998_v34  ;;  %760 = vadd.xlane.f32.xlu0 %v759_v26 }
 0xc95   :  { %1235 = vadd.xlane.f32.xlu1 %v1234_v35  ;;  %996 = vadd.xlane.f32.xlu0 %v995_v28  ;;  %v266_v35 = vsel %vm241_vm3, %v3099_v50, 0.0  ;;  %v269_v28 = vsel %vm241_vm3, %v3103_v52, 0.0 }
 0xc99   :  { %1241 = vadd.xlane.f32.xlu1 %v1240_v24  ;;  %1002 = vadd.xlane.f32.xlu0 %v1001_v33  ;;  %v272_v24 = vsel %vm241_vm3, %v3093_v46, 0.0  ;;  %v275_v33 = vsel %vm241_vm3, %v3095_v47, 0.0 }
 0xc9d   :  { %1477 = vadd.xlane.f32.xlu1 %v1476_v30  ;;  %1238 = vadd.xlane.f32.xlu0 %v1237_v37 }
 0xca1   :  { %1483 = vadd.xlane.f32.xlu1 %v1482_v27  ;;  %1244 = vadd.xlane.f32.xlu0 %v1243_v5 }
 0xca5   :  { %1719 = vadd.xlane.f32.xlu1 %v1718_v39  ;;  %1480 = vadd.xlane.f32.xlu0 %v1479_v6 }
 0xca9   :  { %1725 = vadd.xlane.f32.xlu1 %v1724_v1  ;;  %1486 = vadd.xlane.f32.xlu0 %v1485_v4 }
 0xcad   :  { %1722 = vadd.xlane.f32.xlu0 %v1721_v9 }
 0xcb1   :  { %1728 = vadd.xlane.f32.xlu0 %v1727_v41 }
 0xcd1   :  { %v1941_v25 = vpop.xlane.xlu1 %1940  ;;  %v1944_v2 = vpop.xlane.xlu0 %1943 }
 0xcd2   :  { %v1949_v16 = vsub.f32 %v3439_v8, %v1941_v25  ;;  %v1950_v7 = vsub.f32 %v3441_v60, %v1944_v2 }
 0xcd4   :  { %v1954_v10 = vmul.f32 1.442695, %v1949_v16  ;;  %v1956_v38 = vmul.f32 1.442695, %v1950_v7 }
 0xcd5   :  { %v1975_v21 = vpop.permute.xlu1 %1974  ;;  %v1938_v55 = vpop.xlane.xlu0 %1937 }
 0xcd6   :  { %2811 = vpow2.f32 %v1954_v10  ;;  %v1948_v59 = vsub.f32 %v3437_v48, %v1938_v55  ;;  %2625 = vmatpush3.bf16.msra.mxu1 %v1975_v21 }
 0xcd8   :  { %v1952_v29 = vmul.f32 1.442695, %v1948_v59 }
 0xcd9   :  { %v1947_v53 = vpop.xlane.xlu0 %1946 }
 0xcda   :  { %2813 = vpow2.f32 %v1952_v29  ;;  %v1951_v58 = vsub.f32 %v3447_v11, %v1947_v53 }
 0xcdb   :  { %2815 = vpow2.f32 %v1956_v38 }
 0xcdc   :  { %v1958_v61 = vmul.f32 1.442695, %v1951_v58 }
 0xcdd   :  { %v2022_v0 = vpop.permute.xlu0 %2021 }
 0xcde   :  { %2817 = vpow2.f32 %v1958_v61  ;;  %2631 = vmatpush3.bf16.msra.mxu0 %v2022_v0 }
 0xce3   :  { %v2812_v8 = vpop.eup %2811 }
 0xce4   :  { %v1963_v60 = vsel %vm241_vm3, %v2812_v8, 0.0 }
 0xce5   :  { %1964 = vadd.xlane.f32.xlu0 %v1963_v60 }
 0xce7   :  { %v2814_v13 = vpop.eup %2813 }
 0xce8   :  { %v1960_v14 = vsel %vm241_vm3, %v2814_v13, 0.0  ;;  %v1972_v48 = vpack.c.bf16 %v2812_v8, %v2814_v13  ;;  %v2816_v31 = vpop.eup %2815 }
 0xce9   :  { %1961 = vadd.xlane.f32.xlu1 %v1960_v14  ;;  %v1966_v11 = vsel %vm241_vm3, %v2816_v31, 0.0 }
 0xcea   :  { %2627 = vmatmul.mubr.msk.bf16.vlgmr.msra.gmra.mxu1 %vm241_vm3, %v1972_v48 }
 0xceb   :  { %v2818_v32 = vpop.eup %2817 }
 0xcec   :  { %v1969_v34 = vsel %vm241_vm3, %v2818_v32, 0.0  ;;  %v1973_v26 = vpack.c.bf16 %v2818_v32, %v2816_v31 }
 0xced   :  { %1967 = vadd.xlane.f32.xlu1 %v1966_v11  ;;  %1970 = vadd.xlane.f32.xlu0 %v1969_v34 }
 0xcee   :  { %2633 = vmatmul.mubr.msk.bf16.vlgmr.msra.gmra.mxu0 %vm241_vm3, %v1973_v26 }
 0xcf1   :  { %267 = vadd.xlane.f32.xlu1 %v266_v35  ;;  %270 = vadd.xlane.f32.xlu0 %v269_v28 }
 0xcf5   :  { %273 = vadd.xlane.f32.xlu1 %v272_v24  ;;  %276 = vadd.xlane.f32.xlu0 %v275_v33 }
 0xd06   :  { %v510_v30 = vpop.xlane.xlu1 %509 }
 0xd07   :  { %2819 = vrcp.f32 %v510_v30 }
 0xd0a   :  { %v516_v37 = vpop.xlane.xlu1 %515 }
 0xd0e   :  { %v752_v27 = vpop.xlane.xlu1 %751  ;;  %v513_v5 = vpop.xlane.xlu0 %512 }
 0xd0f   :  { %2821 = vrcp.f32 %v513_v5 }
 0xd10   :  { %2823 = vrcp.f32 %v516_v37 }
 0xd12   :  { %v758_v50 = vpop.xlane.xlu1 %757  ;;  %v519_v39 = vpop.xlane.xlu0 %518 }
 0xd13   :  { %2825 = vrcp.f32 %v519_v39 }
 0xd14   :  { %2827 = vrcp.f32 %v752_v27  ;;  %v2820_v47 = vpop.eup %2819 }
 0xd15   :  { %v620_v25 = vmul.f32 %v2820_v47, %v3174_v43 }
 0xd16   :  { %v994_v52 = vpop.xlane.xlu1 %993  ;;  %v755_v6 = vpop.xlane.xlu0 %754 }
 0xd17   :  { %2829 = vrcp.f32 %v755_v6 }
 0xd18   :  { %2831 = vrcp.f32 %v758_v50 }
 0xd1a   :  { %v1000_v46 = vpop.xlane.xlu1 %999  ;;  %v761_v1 = vpop.xlane.xlu0 %760 }
 0xd1b   :  { %2833 = vrcp.f32 %v761_v1 }
 0xd1c   :  { %v2822_v4 = vpop.eup %2821  ;;  %2835 = vrcp.f32 %v994_v52 }
 0xd1d   :  { %v621_v2 = vmul.f32 %v2822_v4, %v3178_v49  ;;  %v2824_v16 = vpop.eup %2823 }
 0xd1e   :  { %v1236_v9 = vpop.xlane.xlu1 %1235  ;;  %v997_v41 = vpop.xlane.xlu0 %996  ;;  %v622_v59 = vmul.f32 %v2824_v16, %v3176_v44  ;;  %v3614_v16 = vld [vmem:[#allocation16_spill] sm:$0xff] }
 0xd1f   :  { %2837 = vrcp.f32 %v997_v41  ;;  %v2681_v10 = vpack.i.bf16 %v621_v2, %v620_v25 }
 0xd20   :  { %v2826_v7 = vpop.eup %2825  ;;  %2839 = vrcp.f32 %v1000_v46 }
 0xd21   :  { %2682 = vrot.lane.b32.xlu1 %v2681_v10, %s2971_s19  ;;  %v623_v38 = vmul.f32 %v2826_v7, %v3180_v51  ;;  %v2828_v29 = vpop.eup %2827 }
 0xd22   :  { %v1242_v21 = vpop.xlane.xlu1 %1241  ;;  %v1003_v55 = vpop.xlane.xlu0 %1002  ;;  %v862_v61 = vmul.f32 %v2828_v29, %v3226_v40 }
 0xd23   :  { %2841 = vrcp.f32 %v1003_v55  ;;  %v2686_v53 = vpack.i.bf16 %v623_v38, %v622_v59 }
 0xd24   :  { %v2830_v58 = vpop.eup %2829  ;;  %2843 = vrcp.f32 %v1236_v9 }
 0xd25   :  { %2687 = vrot.lane.b32.xlu0 %v2686_v53, %s2971_s19  ;;  %v863_v0 = vmul.f32 %v2830_v58, %v3228_v42  ;;  %v2832_v8 = vpop.eup %2831  ;;  %s3000_s19 = smov 12  }
 0xd26   :  { %v1478_v43 = vpop.xlane.xlu1 %1477  ;;  %v1239_v49 = vpop.xlane.xlu0 %1238  ;;  %v864_v14 = vmul.f32 %v2832_v8, %v3230_v45  ;;  %v2754_v8 = vld [vmem:[#allocation7] sm:$0xff]  }
 0xd27   :  { %2845 = vrcp.f32 %v1239_v49  ;;  %v2691_v60 = vpack.i.bf16 %v863_v0, %v862_v61 }
 0xd28   :  { %v2834_v13 = vpop.eup %2833  ;;  %2847 = vrcp.f32 %v1242_v21 }
 0xd29   :  { %2692 = vrot.lane.b32.xlu1 %v2691_v60, %s2974_s26  ;;  %v865_v48 = vmul.f32 %v2834_v13, %v3232_v54  ;;  %v2836_v31 = vpop.eup %2835 }
 0xd2a   :  { %v1484_v44 = vpop.xlane.xlu1 %1483  ;;  %v1245_v51 = vpop.xlane.xlu0 %1244  ;;  %v1104_v42 = vmul.f32 %v2836_v31, %v3278_v57 }
 0xd2b   :  { %2849 = vrcp.f32 %v1245_v51  ;;  %v2696_v32 = vpack.i.bf16 %v865_v48, %v864_v14 }
 0xd2c   :  { %v2838_v11 = vpop.eup %2837  ;;  %2851 = vrcp.f32 %v1478_v43 }
 0xd2d   :  { %2697 = vrot.lane.b32.xlu1 %v2696_v32, %s2974_s26  ;;  %v1105_v34 = vmul.f32 %v2838_v11, %v3280_v62  ;;  %v2840_v26 = vpop.eup %2839 }
 0xd2e   :  { %v1481_v40 = vpop.xlane.xlu0 %1480  ;;  %v1720_v35 = vpop.xlane.xlu1 %1719  ;;  %v1106_v54 = vmul.f32 %v2840_v26, %v3282_v63 }
 0xd2f   :  { %2853 = vrcp.f32 %v1481_v40  ;;  %v2701_v28 = vpack.i.bf16 %v1105_v34, %v1104_v42 }
 0xd30   :  { %v2842_v24 = vpop.eup %2841  ;;  %2855 = vrcp.f32 %v1484_v44 }
 0xd31   :  { %2702 = vrot.lane.b32.xlu0 %v2701_v28, %s3000_s19  ;;  %v1107_v33 = vmul.f32 %v2842_v24, %v3284_v3  ;;  %v2844_v30 = vpop.eup %2843 }
 0xd32   :  { %v1487_v45 = vpop.xlane.xlu0 %1486  ;;  %v1726_v57 = vpop.xlane.xlu1 %1725  ;;  %v1346_v5 = vmul.f32 %v2844_v30, %v3330_v17 }
 0xd33   :  { %2857 = vrcp.f32 %v1487_v45  ;;  %v2706_v37 = vpack.i.bf16 %v1107_v33, %v1106_v54 }
 0xd34   :  { %v2846_v27 = vpop.eup %2845  ;;  %2859 = vrcp.f32 %v1720_v35 }
 0xd35   :  { %2707 = vrot.lane.b32.xlu1 %v2706_v37, %s3000_s19  ;;  %v1347_v50 = vmul.f32 %v2846_v27, %v3332_v19  ;;  %v2848_v39 = vpop.eup %2847 }
 0xd36   :  { %v1723_v62 = vpop.xlane.xlu0 %1722  ;;  %v1348_v3 = vmul.f32 %v2848_v39, %v3334_v20  ;;  %v3615_v20 = vld [vmem:[#allocation17_spill] sm:$0xff] }
 0xd37   :  { %2861 = vrcp.f32 %v1723_v62  ;;  %v2711_v52 = vpack.i.bf16 %v1347_v50, %v1346_v5 }
 0xd38   :  { %v2850_v6 = vpop.eup %2849  ;;  %2863 = vrcp.f32 %v1726_v57 }
 0xd39   :  { %2712 = vrot.lane.b32.xlu0 %v2711_v52, %s3001_s29  ;;  %v1349_v46 = vmul.f32 %v2850_v6, %v3336_v23  ;;  %v2852_v1 = vpop.eup %2851 }
 0xd3a   :  { %v1729_v63 = vpop.xlane.xlu0 %1728  ;;  %v1588_v17 = vmul.f32 %v2852_v1, %v3382_v18 }
 0xd3b   :  { %2865 = vrcp.f32 %v1729_v63  ;;  %v2716_v47 = vpack.i.bf16 %v1349_v46, %v1348_v3 }
 0xd3c   :  { %v2854_v4 = vpop.eup %2853 }
 0xd3d   :  { %2717 = vrot.lane.b32.xlu1 %v2716_v47, %s3001_s29  ;;  %v1589_v19 = vmul.f32 %v2854_v4, %v3384_v22  ;;  %v2856_v9 = vpop.eup %2855 }
 0xd3e   :  { %v1590_v10 = vmul.f32 %v2856_v9, %v3614_v16 }
 0xd3f   :  { %v2721_v41 = vpack.i.bf16 %v1589_v19, %v1588_v17  ;;  %v3616_v19 = vld [vmem:[#allocation13_spill] sm:$0xff] }
 0xd40   :  { %v2858_v25 = vpop.eup %2857 }
 0xd41   :  { %v2860_v2 = vpop.eup %2859  ;;  %2722 = vrot.lane.b32.xlu0 %v2721_v41, %s3002_s30  ;;  %v1591_v7 = vmul.f32 %v2858_v25, %v3615_v20  ;;  %v3617_v41 = vld [vmem:[#allocation15_spill] sm:$0xff] }
 0xd42   :  { %v1830_v55 = vmul.f32 %v2860_v2, %v3429_v56 }
 0xd43   :  { %v2726_v21 = vpack.i.bf16 %v1591_v7, %v1590_v10  ;;  %v3618_v10 = vld [vmem:[#allocation12_spill] sm:$0xff]  ;;  %v3619_v7 = vld [vmem:[#allocation14_spill] sm:$0xff] }
 0xd44   :  { %v2862_v23 = vpop.eup %2861 }
 0xd45   :  { %v1831_v59 = vmul.f32 %v2862_v23, %v3431_v12  ;;  %v2864_v38 = vpop.eup %2863  ;;  %2727 = vrot.lane.b32.xlu1 %v2726_v21, %s3002_s30  ;;  %v2753_v12 = vld [vmem:[#allocation7 + $0x8] sm:$0xff]  }
 0xd46   :  { %v1832_v29 = vmul.f32 %v2864_v38, %v3433_v15  ;;  %2636 = vmatprep.subr.bf16.mxu1 %v2753_v12 }
 0xd47   :  { %v2731_v18 = vpack.i.bf16 %v1831_v59, %v1830_v55  ;;  %2637 = vmatpush3.bf16.msra.mxu1 %v2753_v12 }
 0xd48   :  { %v2866_v22 = vpop.eup %2865  ;;  %2638 = vmatprep.subr.bf16.mxu1 %v2754_v8 }
 0xd49   :  { %2732 = vrot.lane.b32.xlu0 %v2731_v18, %s3003_s5  ;;  %v1833_v53 = vmul.f32 %v2866_v22, %v3435_v36 }
 0xd4b   :  { %v2736_v58 = vpack.i.bf16 %v1833_v53, %v1832_v29  ;;  %2639 = vmatpush3.bf16.msra.mxu1 %v2754_v8 }
 0xd4d   :  { %2737 = vrot.lane.b32.xlu1 %v2736_v58, %s3003_s5 }
 0xd6e   :  { %v1965_v49 = vpop.xlane.xlu0 %1964 }
 0xd6f   :  { %2867 = vrcp.f32 %v1965_v49 }
 0xd72   :  { %v1962_v43 = vpop.xlane.xlu1 %1961 }
 0xd73   :  { %2869 = vrcp.f32 %v1962_v43 }
 0xd76   :  { %v1968_v61 = vpop.xlane.xlu1 %1967  ;;  %v1971_v56 = vpop.xlane.xlu0 %1970 }
 0xd77   :  { %2871 = vrcp.f32 %v1968_v61 }
 0xd78   :  { %2873 = vrcp.f32 %v1971_v56 }
 0xd7a   :  { %v268_v24 = vpop.xlane.xlu1 %267  ;;  %v271_v45 = vpop.xlane.xlu0 %270 }
 0xd7b   :  { %2875 = vrcp.f32 %v268_v24 }
 0xd7c   :  { %v2868_v15 = vpop.eup %2867  ;;  %2877 = vrcp.f32 %v271_v45 }
 0xd7e   :  { %v274_v54 = vpop.xlane.xlu1 %273  ;;  %v277_v30 = vpop.xlane.xlu0 %276 }
 0xd7f   :  { %2879 = vrcp.f32 %v274_v54 }
 0xd80   :  { %v2870_v36 = vpop.eup %2869  ;;  %2881 = vrcp.f32 %v277_v30 }
 0xd84   :  { %v2872_v11 = vpop.eup %2871 }
 0xd85   :  { %v2874_v40 = vpop.eup %2873 }
 0xd88   :  { %v2876_v50 = vpop.eup %2875 }
 0xd89   :  { %v2878_v52 = vpop.eup %2877  ;;  %v378_v9 = vmul.f32 %v2876_v50, %v3616_v19 }
 0xd8a   :  { %v379_v25 = vmul.f32 %v2878_v52, %v3617_v41 }
 0xd8c   :  { %v2880_v6 = vpop.eup %2879 }
 0xd8d   :  { %v2882_v63 = vpop.eup %2881  ;;  %v380_v20 = vmul.f32 %v2880_v6, %v3618_v10 }
 0xd8e   :  { %v381_v23 = vmul.f32 %v2882_v63, %v3619_v7 }
 0xd93   :  { %v2683_v33 = vpop.permute.xlu1 %2682 }
 0xd94   :  { %v2685_v3 = vunpack.i.h.bf16 %v2683_v33  ;;  %v2684_v46 = vunpack.i.l.bf16 %v2683_v33 }
 0xd96   :  { %v2188_v59 = vsel %vm143_vm2, %v378_v9, %v2684_v46  ;;  %v2189_v38 = vsel %vm143_vm2, %v379_v25, %v2685_v3  ;;  %v2359_v25 = vld [vmem:[%s3603_s3] ss:$0 sm:$0xff]  ;;  %s2943_s3 = scalar_lea.vmem %s2311_s8, 512 }
 0xd97   :  { %v2688_v27 = vpop.permute.xlu0 %2687  ;;  %p2944_p1 = scmp.ne.s32.totalorder %s2311_s8, %s2943_s3  ;;  %p2949_p3 = scmp.lt.s32.totalorder %s2943_s3, %s2943_s3 }
 0xd98   :  { %v2690_v47 = vunpack.i.h.bf16 %v2688_v27  ;;  %v2689_v4 = vunpack.i.l.bf16 %v2688_v27 }
 0xd99   :  { %p2950_p4 = por %p2949_p3, %p2948_p2 }
 0xd9a   :  { %v2191_v53 = vsel %vm143_vm2, %v381_v23, %v2690_v47  ;;  %v2190_v58 = vsel %vm143_vm2, %v380_v20, %v2689_v4 }
 0xd9b   :  { %v2693_v37 = vpop.permute.xlu1 %2692  ;;  %p2951_p5 = pnand %p2950_p4, %p2944_p1 }
 0xd9c   :  { %v2695_v2 = vunpack.i.h.bf16 %v2693_v37  ;;  %v2694_v16 = vunpack.i.l.bf16 %v2693_v37 }
 0xd9e   :  { %v2193_v56 = vsel %vm2192_vm4, %v2188_v59, %v2694_v16  ;;  %v2194_v12 = vsel %vm2192_vm4, %v2189_v38, %v2695_v2 }
 0xd9f   :  { %v2698_v62 = vpop.permute.xlu1 %2697 }
 0xda0   :  { %v2700_v21 = vunpack.i.h.bf16 %v2698_v62  ;;  %v2699_v55 = vunpack.i.l.bf16 %v2698_v62 }
 0xda3   :  { %v2703_v57 = vpop.permute.xlu0 %2702 }
 0xda4   :  { %v2705_v18 = vunpack.i.h.bf16 %v2703_v57  ;;  %v2704_v22 = vunpack.i.l.bf16 %v2703_v57 }
 0xda7   :  { %v3549_v39 = vpop.permute.xlu1 %2707 }
 0xdaa   :  { %v2014_v0 = vpop.f32.mrf.mxu1 }
 0xdab   :  { %v2072_v51 = vmul.f32 %v2870_v36, %v2014_v0  ;;  %v2713_v5 = vpop.permute.xlu0 %2712 }
 0xdac   :  { %v2628_v60 = vpop.f32.mrf.mxu1  ;;  %v2715_v43 = vunpack.i.h.bf16 %v2713_v5  ;;  %v2714_v49 = vunpack.i.l.bf16 %v2713_v5 }
 0xdad   :  { %v2195_v60 = vsel %vm2192_vm4, %v2190_v58, %v2699_v55 }
 0xdae   :  { %v2017_v13 = vpop.f32.mrf.mxu1  ;;  %v2061_v44 = vpop.f32.mrf.mxu0 }
 0xdaf   :  { %v2073_v14 = vmul.f32 %v2868_v15, %v2017_v13  ;;  %v2074_v34 = vmul.f32 %v2872_v11, %v2061_v44  ;;  %v2718_v17 = vpop.permute.xlu1 %2717  ;;  %v2196_v15 = vsel %vm2192_vm4, %v2191_v53, %v2700_v21  ;;  %v2199_v44 = vsel %vm2197_vm5, %v2194_v12, %v2705_v18 }
 0xdb0   :  { %v2629_v48 = vpop.f32.mrf.mxu1  ;;  %v2634_v32 = vpop.f32.mrf.mxu0  ;;  %v2720_v11 = vunpack.i.h.bf16 %v2718_v17 }
 0xdb1   :  { %v2741_v31 = vpack.i.bf16 %v2073_v14, %v2072_v51  ;;  %v2198_v51 = vsel %vm2197_vm5, %v2193_v56, %v2704_v22  ;;  %v2710_v14 = vunpack.i.h.bf16 %v3549_v39  ;;  %v2709_v48 = vunpack.i.l.bf16 %v3549_v39 }
 0xdb2   :  { %v2064_v42 = vpop.f32.mrf.mxu0  ;;  %v2203_v32 = vsel %vm241_vm3, %v2199_v44, %v2715_v43 }
 0xdb3   :  { %2742 = vrot.lane.b32.xlu0 %v2741_v31, %s3004_s6  ;;  %v2075_v26 = vmul.f32 %v2874_v40, %v2064_v42  ;;  %v2723_v1 = vpop.permute.xlu0 %2722  ;;  %v2202_v31 = vsel %vm241_vm3, %v2198_v51, %v2714_v49  ;;  %v2719_v40 = vunpack.i.l.bf16 %v2718_v17  ;;  %v2200_v5 = vsel %vm2197_vm5, %v2195_v60, %v2709_v48 }
 0xdb4   :  { %v2635_v35 = vpop.f32.mrf.mxu0  ;;  %v2725_v0 = vunpack.i.h.bf16 %v2723_v1  ;;  %v2724_v8 = vunpack.i.l.bf16 %v2723_v1  ;;  %v2201_v50 = vsel %vm2197_vm5, %v2196_v15, %v2710_v14 }
 0xdb5   :  { %v2746_v28 = vpack.i.bf16 %v2075_v26, %v2074_v34  ;;  %v2204_v52 = vsel %vm241_vm3, %v2200_v5, %v2719_v40  ;;  %v2205_v6 = vsel %vm241_vm3, %v2201_v50, %v2720_v11 }
 0xdb6   :  { %v2207_v26 = vsel %vm2206_vm6, %v2202_v31, %v2724_v8  ;;  %v2208_v35 = vsel %vm2206_vm6, %v2203_v32, %v2725_v0 }
 0xdb7   :  { %2747 = vrot.lane.b32.xlu1 %v2746_v28, %s3004_s6  ;;  %v2728_v61 = vpop.permute.xlu1 %2727 }
 0xdb8   :  { %v2730_v45 = vunpack.i.h.bf16 %v2728_v61  ;;  %v2729_v54 = vunpack.i.l.bf16 %v2728_v61 }
 0xdba   :  { %v2209_v3 = vsel %vm2206_vm6, %v2204_v52, %v2729_v54  ;;  %v2210_v46 = vsel %vm2206_vm6, %v2205_v6, %v2730_v45 }
 0xdbb   :  { %v2733_v29 = vpop.permute.xlu0 %2732 }
 0xdbc   :  { %v2735_v36 = vunpack.i.h.bf16 %v2733_v29  ;;  %v2734_v13 = vunpack.i.l.bf16 %v2733_v29 }
 0xdbe   :  { %v2212_v33 = vsel %vm2211_vm7, %v2207_v26, %v2734_v13  ;;  %v2213_v30 = vsel %vm2211_vm7, %v2208_v35, %v2735_v36 }
 0xdbf   :  { %v2738_v42 = vpop.permute.xlu1 %2737 }
 0xdc0   :  { %v2740_v37 = vunpack.i.h.bf16 %v2738_v42  ;;  %v2739_v27 = vunpack.i.l.bf16 %v2738_v42 }
 0xdc2   :  { %v2214_v4 = vsel %vm2211_vm7, %v2209_v3, %v2739_v27  ;;  %v2215_v17 = vsel %vm2211_vm7, %v2210_v46, %v2740_v37 }
 0xe25   :  { %v2743_v34 = vpop.permute.xlu0 %2742 }
 0xe26   :  { %v2745_v28 = vunpack.i.h.bf16 %v2743_v34  ;;  %v2744_v24 = vunpack.i.l.bf16 %v2743_v34 }
 0xe28   :  { %v2217_v57 = vsel %vm2216_vm8, %v2212_v33, %v2744_v24  ;;  %v2218_v62 = vsel %vm2216_vm8, %v2213_v30, %v2745_v28 }
 0xe29   :  { %v2221_v39 = vpack.c.bf16 %v2218_v62, %v2217_v57  ;;  %v2748_v63 = vpop.permute.xlu1 %2747 }
 0xe2a   :  { %v2750_v1 = vunpack.i.h.bf16 %v2748_v63  ;;  %v2749_v47 = vunpack.i.l.bf16 %v2748_v63 }
 0xe2b   :  { %2640 = vmatprep.mubr.msk.bf16.mxu1 %vm82_vm0, %v2221_v39 }
 0xe2c   :  { %v2220_v19 = vsel %vm2216_vm8, %v2215_v17, %v2750_v1  ;;  %v2219_v9 = vsel %vm2216_vm8, %v2214_v4, %v2749_v47 }
 0xe2d   :  { %v2222_v41 = vpack.c.bf16 %v2220_v19, %v2219_v9 }
 0xe2f   :  { %2641 = vmatmul.mubr.msk.bf16.vlgmr.msra.gmra.mxu1 %vm82_vm0, %v2222_v41 }
 0xeef   :  { %v2642_v2 = vpop.f32.mrf.mxu1 }
 0xef0   :  { %v2295_v16 = vadd.f32 %v2642_v2, %v2359_v25 }
 0xef1   :  { %v2286_v10 = vpop.f32.mrf.mxu1 }
 0xef2   :  { %2303 = vst.msk [vmem:[#allocation8 + $0x10] sm:$0xff] %vm82_vm0, %v2295_v16  ;;  %v2287_v20 = vadd.f32 %v2359_v25, %v2286_v10 }
 0xef3   :  { %v2643_v7 = vpop.f32.mrf.mxu1 }
 0xef4   :  { %2301 = vst.msk [vmem:[#allocation8] sm:$0xff] %vm82_vm0, %v2287_v20  ;;  %v2298_v23 = vadd.f32 %v2643_v7, %v2359_v25 }
 0xef5   :  { %v2289_v21 = vpop.f32.mrf.mxu1 }
 0xef6   :  { %2304 = vst.msk [vmem:[#allocation8 + $0x18] sm:$0xff] %vm82_vm0, %v2298_v23  ;;  %v2290_v55 = vadd.f32 %v2359_v25, %v2289_v21 }
 0xef8   :  { %2302 = vst.msk [vmem:[#allocation8 + $0x8] sm:$0xff] %vm82_vm0, %v2290_v55 }
 0xef9   :  { %2954 = shalt.err (!%p2951_p5)
}
 0xefa   :  { %2316 = dma.vmem_to_hbm [thread:$0]  %s2311_s8, 512, %s3604_s4, [#allocation4], %s2973_s25, %s2973_s25, %s2974_s26  }
 0xefb   :  { %2967 = dma.done.wait [#allocation4], 512  }
 0xefc   :  { %2968 = vsyncadd [#allocation4], 4294966784 }
 0xefd   :  { %2320 = vsyncpa [#allocation3], 1 }
 0xefe   :  { %2321 = vsyncpa [#allocation6], 1 }
 0xeff   :  { %2322 = vsyncpa [#allocation4], 1 }

</bundles_post_ra>
